<compile_context>
chip_gen: v7x
topology: tpu7x:2x2x1
jax: 0.10.0
libtpu: 0.0.40
codegen_flags: <defaults>
</compile_context>

<pallas_src>
import math

import jax
import jax.numpy as jnp
import numpy as np
from jax import lax
from jax.experimental import pallas as pl
from jax.experimental.pallas import tpu as pltpu

NEG_INF = -1e20          # ParlAI neginf(float32)
LN_EPS = 1e-5            # torch.nn.LayerNorm default
VMEM_LIMIT = 48 * 1024 * 1024   # safe on v5e/v6e (128 MiB) and v7x (64 MiB)


# ----------------------------------------------------------------------------
# tiling helpers
# ----------------------------------------------------------------------------
def _seq_tile(s, target=256):
    """Query-row tile: largest divisor of s that is a multiple of 8 and
    <= target, else s (block == full dim is always legal)."""
    if s <= target:
        return s
    for t in range(target, 7, -1):
        if s % t == 0 and t % 8 == 0:
            return t
    return s


def _row_tile(n, target=512):
    """FFN row tile: largest divisor of n that is a multiple of 8, <= target,
    and leaves >= 2 tiles when possible (so both v7x TCs get work)."""
    cap = min(target, max(8, n // 2))
    for tm in range(cap, 7, -1):
        if n % tm == 0 and tm % 8 == 0:
            return tm
    return n


def _ffn_k_tile(f, target=2048):
    """FFN hidden-dim (reduction) tile: multiple of 128 dividing f, <= target."""
    if f <= target:
        return f
    for tf in range(target - target % 128, 127, -128):
        if f % tf == 0:
            return tf
    return f


# ----------------------------------------------------------------------------
# Fused attention-block kernel:
#   Q / K|V proj -> batched per-head attention (masked softmax) -> out proj
#   -> residual add -> LayerNorm.   Grid = (batch, q_tiles), everything in VMEM.
# ----------------------------------------------------------------------------
def _make_attn_block_kernel(n_heads, dh, causal, tq):
    d = n_heads * dh

    def body(qsrc_ref, kvsrc_ref, mask_ref, wq_ref, bq_ref, wkv_ref, bkv_ref,
             wo_ref, bo_ref, g_ref, b_ref, o_ref,
             q3_ref, k3_ref, v3_ref, att_ref):
        x_bf = qsrc_ref[0]                       # [tq, D]  bf16 (residual src)
        kv_src = kvsrc_ref[0]                    # [Skv, D] bf16
        skv = kv_src.shape[0]

        # --- projections (bf16 weights pre-cast; 1/sqrt(dh) folded into wq/bq;
        #     fp32 accumulation) ---
        q = jnp.dot(x_bf, wq_ref[...],
                    preferred_element_type=jnp.float32) + bq_ref[...]
        kv = jnp.dot(kv_src, wkv_ref[...],
                     preferred_element_type=jnp.float32) + bkv_ref[...]
        k = kv[:, :d]
        v = kv[:, d:]

        # --- head split into head-leading 3-D VMEM scratch (static lane
        #     slices; no concatenate, no value reshapes) ---
        for h in range(n_heads):
            sl = slice(h * dh, (h + 1) * dh)
            q3_ref[h] = q[:, sl].astype(jnp.bfloat16)
            k3_ref[h] = k[:, sl].astype(jnp.bfloat16)
            v3_ref[h] = v[:, sl].astype(jnp.bfloat16)

        # --- mask, built in-kernel (no [B*H, Sq, Sk] HBM tensor) ---
        if causal:
            q_off = pl.program_id(1) * tq
            row = lax.broadcasted_iota(jnp.int32, (tq, skv), 0) + q_off
            col = lax.broadcasted_iota(jnp.int32, (tq, skv), 1)
            msk = row >= col
        else:
            msk = jnp.broadcast_to(mask_ref[0] > 0.0, (tq, skv))

        # --- batched attention: one dot_general for scores, one for p@v ---
        qh = q3_ref[...]                          # [H, tq, dh]  bf16
        kh = k3_ref[...]                          # [H, Skv, dh] bf16
        vh = v3_ref[...]                          # [H, Skv, dh] bf16
        s = jnp.einsum('hqd,hkd->hqk', qh, kh,
                       preferred_element_type=jnp.float32)     # [H, tq, Skv]
        s = jnp.where(msk[None, :, :], s, NEG_INF)
        s = s - jnp.max(s, axis=-1, keepdims=True)
        p = jnp.exp(s)
        p = p * pl.reciprocal(jnp.sum(p, axis=-1, keepdims=True), approx=True)
        o3 = jnp.einsum('hqk,hkd->hqd', p.astype(jnp.bfloat16), vh,
                        preferred_element_type=jnp.float32)    # [H, tq, dh]

        # --- merge heads via lane-offset scratch stores ---
        for h in range(n_heads):
            att_ref[:, h * dh:(h + 1) * dh] = o3[h].astype(jnp.bfloat16)

        # --- out projection + residual + LayerNorm (fp32 math) ---
        y = jnp.dot(att_ref[...], wo_ref[...],
                    preferred_element_type=jnp.float32) + bo_ref[...]
        y = y + x_bf.astype(jnp.float32)
        mean = jnp.mean(y, axis=-1, keepdims=True)
        var = jnp.mean((y - mean) ** 2, axis=-1, keepdims=True)
        inv = lax.rsqrt(var + LN_EPS)
        o_ref[0] = ((y - mean) * inv * g_ref[...] + b_ref[...]).astype(o_ref.dtype)

    if causal:
        def kernel(qsrc_ref, kvsrc_ref, wq_ref, bq_ref, wkv_ref, bkv_ref,
                   wo_ref, bo_ref, g_ref, b_ref, o_ref,
                   q3_ref, k3_ref, v3_ref, att_ref):
            body(qsrc_ref, kvsrc_ref, None, wq_ref, bq_ref, wkv_ref, bkv_ref,
                 wo_ref, bo_ref, g_ref, b_ref, o_ref,
                 q3_ref, k3_ref, v3_ref, att_ref)
    else:
        def kernel(qsrc_ref, kvsrc_ref, mask_ref, wq_ref, bq_ref, wkv_ref,
                   bkv_ref, wo_ref, bo_ref, g_ref, b_ref, o_ref,
                   q3_ref, k3_ref, v3_ref, att_ref):
            body(qsrc_ref, kvsrc_ref, mask_ref, wq_ref, bq_ref, wkv_ref,
                 bkv_ref, wo_ref, bo_ref, g_ref, b_ref, o_ref,
                 q3_ref, k3_ref, v3_ref, att_ref)
    return kernel


def _fused_attn_block(x, kv_src, mask_b1s, attn_p, ln_g, ln_b, n_heads, causal):
    """x: [B, Sq, D] bf16, kv_src: [B, Skv, D] bf16, mask_b1s: [B,1,Skv] fp32
    (ignored for causal) -> [B, Sq, D] bf16."""
    b, sq, d = x.shape
    skv = kv_src.shape[1]
    dh = d // n_heads
    tq = _seq_tile(sq)
    kernel = _make_attn_block_kernel(n_heads, dh, causal, tq)

    def w_spec(shape):
        return pl.BlockSpec(shape, lambda i, j: (0, 0))

    in_specs = [
        pl.BlockSpec((1, tq, d), lambda i, j: (i, j, 0)),    # q-source tile
        pl.BlockSpec((1, skv, d), lambda i, j: (i, 0, 0)),   # kv source (full)
    ]
    args = [x, kv_src]
    if not causal:
        in_specs.append(pl.BlockSpec((1, 1, skv), lambda i, j: (i, 0, 0)))
        args.append(mask_b1s)
    in_specs += [
        w_spec((d, d)), w_spec((1, d)),           # wq, bq
        w_spec((d, 2 * d)), w_spec((1, 2 * d)),   # wkv, bkv
        w_spec((d, d)), w_spec((1, d)),           # wo, bo
        w_spec((1, d)), w_spec((1, d)),           # ln gamma, beta
    ]
    args += [attn_p["wq"], attn_p["bq"], attn_p["wkv"], attn_p["bkv"],
             attn_p["wo"], attn_p["bo"], ln_g, ln_b]

    return pl.pallas_call(
        kernel,
        out_shape=jax.ShapeDtypeStruct((b, sq, d), jnp.bfloat16),
        grid=(b, sq // tq),
        in_specs=in_specs,
        out_specs=pl.BlockSpec((1, tq, d), lambda i, j: (i, j, 0)),
        scratch_shapes=[
            pltpu.VMEM((n_heads, tq, dh), jnp.bfloat16),    # q heads
            pltpu.VMEM((n_heads, skv, dh), jnp.bfloat16),   # k heads
            pltpu.VMEM((n_heads, skv, dh), jnp.bfloat16),   # v heads
            pltpu.VMEM((tq, d), jnp.bfloat16),              # merged attn out
        ],
        compiler_params=pltpu.CompilerParams(
            dimension_semantics=("parallel", "parallel"),
            vmem_limit_bytes=VMEM_LIMIT),
    )(*args)


# ----------------------------------------------------------------------------
# Fused FFN kernel, K-tiled over the ffn dim:
#   acc += relu(x @ w1[:,kf] + b1[kf]) @ w2[kf,:]
#   last kf: + b2 + residual, LayerNorm.
# ----------------------------------------------------------------------------
def _ffn_kernel(x_ref, w1_ref, b1_ref, w2_ref, b2_ref, g_ref, b_ref,
                o_ref, acc_ref):
    kf = pl.program_id(1)

    @pl.when(kf == 0)
    def _():
        acc_ref[...] = jnp.zeros_like(acc_ref)

    h = jnp.dot(x_ref[...], w1_ref[...],
                preferred_element_type=jnp.float32) + b1_ref[...]
    h = jnp.maximum(h, 0.0)
    acc_ref[...] += jnp.dot(h.astype(jnp.bfloat16), w2_ref[...],
                            preferred_element_type=jnp.float32)

    @pl.when(kf == pl.num_programs(1) - 1)
    def _():
        y = acc_ref[...] + b2_ref[...] + x_ref[...].astype(jnp.float32)
        mean = jnp.mean(y, axis=-1, keepdims=True)
        var = jnp.mean((y - mean) ** 2, axis=-1, keepdims=True)
        inv = lax.rsqrt(var + LN_EPS)
        o_ref[...] = ((y - mean) * inv * g_ref[...] + b_ref[...]).astype(o_ref.dtype)


def _fused_ffn_block(x2d, layer_p):
    """x2d: [N, D] bf16 -> [N, D] bf16."""
    n, d = x2d.shape
    f = layer_p["ffn_w1"].shape[1]
    tm = _row_tile(n)
    tf = _ffn_k_tile(f)
    return pl.pallas_call(
        _ffn_kernel,
        out_shape=jax.ShapeDtypeStruct((n, d), jnp.bfloat16),
        grid=(n // tm, f // tf),
        in_specs=[
            pl.BlockSpec((tm, d), lambda i, k: (i, 0)),     # x rows
            pl.BlockSpec((d, tf), lambda i, k: (0, k)),     # w1 chunk
            pl.BlockSpec((1, tf), lambda i, k: (0, k)),     # b1 chunk
            pl.BlockSpec((tf, d), lambda i, k: (k, 0)),     # w2 chunk
            pl.BlockSpec((1, d), lambda i, k: (0, 0)),      # b2
            pl.BlockSpec((1, d), lambda i, k: (0, 0)),      # ln gamma
            pl.BlockSpec((1, d), lambda i, k: (0, 0)),      # ln beta
        ],
        out_specs=pl.BlockSpec((tm, d), lambda i, k: (i, 0)),
        scratch_shapes=[pltpu.VMEM((tm, d), jnp.float32)],   # fp32 accumulator
        compiler_params=pltpu.CompilerParams(
            dimension_semantics=("parallel", "arbitrary"),
            vmem_limit_bytes=VMEM_LIMIT),
    )(x2d, layer_p["ffn_w1"], layer_p["ffn_b1"], layer_p["ffn_w2"],
      layer_p["ffn_b2"], layer_p["norm3_g"], layer_p["norm3_b"])


# ----------------------------------------------------------------------------
# Transformer decoder glue (matches ParlAI TransformerDecoder / DecoderLayer)
# ----------------------------------------------------------------------------
def _decoder_layer(p, x, encoder_output, enc_mask_b1s, n_heads):
    b, s, d = x.shape
    # causal self-attention + residual + norm1   (one pallas_call; no mask input)
    x = _fused_attn_block(x, x, None, p["self_attn"],
                          p["norm1_g"], p["norm1_b"], n_heads, causal=True)
    # encoder attention + residual + norm2       (one pallas_call)
    x = _fused_attn_block(x, encoder_output, enc_mask_b1s, p["enc_attn"],
                          p["norm2_g"], p["norm2_b"], n_heads, causal=False)
    # FFN + residual + norm3                     (one pallas_call, K-tiled)
    x = _fused_ffn_block(x.reshape(b * s, d), p).reshape(b, s, d)
    return x


def transformer_decoder_forward(params, input_ids, encoder_state, incr_state=None):
    encoder_output, encoder_mask = encoder_state
    b, s = input_ids.shape
    d = params["embed"].shape[1]
    sk = encoder_output.shape[1]

    # embeddings + scale + positions (left to XLA: tiny, fuses well)
    x = jnp.take(params["embed"], input_ids, axis=0)             # [B, S, D]
    x = x * math.sqrt(d)                                          # embeddings_scale
    x = x + params["pos"][:s][None, :, :]
    x = x.astype(jnp.bfloat16)        # bf16 activations between kernels

    enc_mask_b1s = encoder_mask.astype(jnp.float32).reshape(b, 1, sk)
    encoder_output = encoder_output.astype(jnp.bfloat16)

    for layer_p in params["layers"]:
        x = _decoder_layer(layer_p, x, encoder_output, enc_mask_b1s,
                           params["n_heads"])
    return x.astype(jnp.float32), None


def context_knowledge_decoder_forward(params, input_ids, encoder_state, incr_state=None):
    """Exact semantics of ContextKnowledgeDecoder.forward."""
    encoder_output, encoder_mask, _ = encoder_state
    return transformer_decoder_forward(
        params, input_ids, (encoder_output, encoder_mask), incr_state
    )


# ----------------------------------------------------------------------------
# Deterministic parameter construction (weights pre-cast to bf16,
# 1/sqrt(dh) folded into the Q projection)
# ----------------------------------------------------------------------------
def _sinusoidal_positions(n_pos, dim):
    pos_enc = np.array(
        [[p / np.power(10000.0, 2 * j / dim) for j in range(dim // 2)]
         for p in range(n_pos)]
    )
    out = np.zeros((n_pos, dim), dtype=np.float32)
    out[:, 0::2] = np.sin(pos_enc)
    out[:, 1::2] = np.cos(pos_enc)
    return jnp.asarray(out)


def make_params(key, vocab, d, n_heads, ffn, n_layers, n_positions):
    dh = d // n_heads
    scale = 1.0 / math.sqrt(dh)

    def nrm(k, shape, std):
        return jax.random.normal(k, shape, jnp.float32) * std

    keys = jax.random.split(key, 1 + n_layers)
    params = {
        "embed": nrm(keys[0], (vocab, d), d ** -0.5).astype(jnp.float32),
        "pos": _sinusoidal_positions(n_positions, d),
        "n_heads": n_heads,
        "layers": [],
    }
    for li in range(n_layers):
        lk = jax.random.split(keys[1 + li], 12)

        def attn_p(ks):
            return {
                # query scale folded into wq/bq; weights stored bf16 once
                "wq": (nrm(ks[0], (d, d), 0.02) * scale).astype(jnp.bfloat16),
                "bq": jnp.zeros((1, d), jnp.float32),
                # K and V projection weights concatenated: one matmul in-kernel
                "wkv": jnp.concatenate(
                    [nrm(ks[1], (d, d), 0.02), nrm(ks[2], (d, d), 0.02)],
                    axis=1).astype(jnp.bfloat16),
                "bkv": jnp.zeros((1, 2 * d), jnp.float32),
                "wo": nrm(ks[3], (d, d), 0.02).astype(jnp.bfloat16),
                "bo": jnp.zeros((1, d), jnp.float32),
            }

        params["layers"].append({
            "self_attn": attn_p(lk[0:4]),
            "enc_attn": attn_p(lk[4:8]),
            "norm1_g": jnp.ones((1, d), jnp.float32),
            "norm1_b": jnp.zeros((1, d), jnp.float32),
            "norm2_g": jnp.ones((1, d), jnp.float32),
            "norm2_b": jnp.zeros((1, d), jnp.float32),
            "norm3_g": jnp.ones((1, d), jnp.float32),
            "norm3_b": jnp.zeros((1, d), jnp.float32),
            "ffn_w1": nrm(lk[8], (d, ffn), 0.02).astype(jnp.bfloat16),
            "ffn_b1": jnp.zeros((1, ffn), jnp.float32),
            "ffn_w2": nrm(lk[9], (ffn, d), 0.02).astype(jnp.bfloat16),
            "ffn_b2": jnp.zeros((1, d), jnp.float32),
        })
    return params


# ----------------------------------------------------------------------------
if __name__ == "__main__":
    B, S_DEC, S_ENC = 2, 8, 16
    D, H, FFN = 128, 4, 256          # lane-dense small demo dims (dh = 32)
    VOCAB, N_LAYERS, N_POS = 50, 2, 64

    root = jax.random.PRNGKey(0)
    k_param, k_ids, k_enc = jax.random.split(root, 3)

    params = make_params(k_param, VOCAB, D, H, FFN, N_LAYERS, N_POS)

    input_ids = jax.random.randint(k_ids, (B, S_DEC), 1, VOCAB)
    encoder_output = jax.random.normal(k_enc, (B, S_ENC, D), jnp.float32)
    # encoder mask: example 0 fully valid, example 1 has 4 padding positions
    enc_lengths = jnp.array([[S_ENC], [S_ENC - 4]])
    encoder_mask = (jnp.arange(S_ENC)[None, :] < enc_lengths)
    # third element of encoder_state (ck_attn) is ignored by the decoder
    encoder_state = (encoder_output, encoder_mask, None)

    out, new_incr_state = context_knowledge_decoder_forward(
        params, input_ids, encoder_state, incr_state=None
    )
    out = jax.block_until_ready(out)

    assert out.shape == (B, S_DEC, D), out.shape
    assert new_incr_state is None
    assert bool(jnp.all(jnp.isfinite(out)))
    print("KERNEL_OK")
</pallas_src>

<mosaic_0001>
module attributes {stable_mosaic.version = 11 : i64} {
  func.func @kernel(%arg0: i32, %arg1: i32, %arg2: memref<1x8x128xbf16, #tpu.memory_space<vmem>>, %arg3: memref<1x8x128xbf16, #tpu.memory_space<vmem>>, %arg4: memref<128x128xbf16, #tpu.memory_space<vmem>>, %arg5: memref<1x128xf32, #tpu.memory_space<vmem>>, %arg6: memref<128x256xbf16, #tpu.memory_space<vmem>>, %arg7: memref<1x256xf32, #tpu.memory_space<vmem>>, %arg8: memref<128x128xbf16, #tpu.memory_space<vmem>>, %arg9: memref<1x128xf32, #tpu.memory_space<vmem>>, %arg10: memref<1x128xf32, #tpu.memory_space<vmem>>, %arg11: memref<1x128xf32, #tpu.memory_space<vmem>>, %arg12: memref<1x8x128xbf16, #tpu.memory_space<vmem>>, %arg13: memref<4x8x32xbf16, #tpu.memory_space<vmem>>, %arg14: memref<4x8x32xbf16, #tpu.memory_space<vmem>>, %arg15: memref<4x8x32xbf16, #tpu.memory_space<vmem>>, %arg16: memref<8x128xbf16, #tpu.memory_space<vmem>>) attributes {dimension_semantics = [#tpu.dimension_semantics<parallel>, #tpu.dimension_semantics<parallel>], iteration_bounds = array<i64: 2, 1>, scalar_prefetch = 0 : i64, scratch_operands = 4 : i64, tpu.core_type = #tpu.core_type<tc>, window_params = [{transform_indices = @transform_0, window_bounds = array<i64: 1, 8, 128>}, {transform_indices = @transform_1, window_bounds = array<i64: 1, 8, 128>}, {pipeline_mode = #tpu.pipeline_mode<synchronous>, transform_indices = @transform_2, window_bounds = array<i64: 128, 128>}, {pipeline_mode = #tpu.pipeline_mode<synchronous>, transform_indices = @transform_3, window_bounds = array<i64: 1, 128>}, {pipeline_mode = #tpu.pipeline_mode<synchronous>, transform_indices = @transform_4, window_bounds = array<i64: 128, 256>}, {pipeline_mode = #tpu.pipeline_mode<synchronous>, transform_indices = @transform_5, window_bounds = array<i64: 1, 256>}, {pipeline_mode = #tpu.pipeline_mode<synchronous>, transform_indices = @transform_6, window_bounds = array<i64: 128, 128>}, {pipeline_mode = #tpu.pipeline_mode<synchronous>, transform_indices = @transform_7, window_bounds = array<i64: 1, 128>}, {pipeline_mode = #tpu.pipeline_mode<synchronous>, transform_indices = @transform_8, window_bounds = array<i64: 1, 128>}, {pipeline_mode = #tpu.pipeline_mode<synchronous>, transform_indices = @transform_9, window_bounds = array<i64: 1, 128>}, {transform_indices = @transform_10, window_bounds = array<i64: 1, 8, 128>}]} {
    %c0 = arith.constant 0 : index
    %c0_0 = arith.constant 0 : index
    %c0_1 = arith.constant 0 : index
    %0 = vector.load %arg2[%c0, %c0_0, %c0_1] : memref<1x8x128xbf16, #tpu.memory_space<vmem>>, vector<1x8x128xbf16>
    %1 = vector.shape_cast %0 : vector<1x8x128xbf16> to vector<8x128xbf16>
    %c0_2 = arith.constant 0 : index
    %c0_3 = arith.constant 0 : index
    %c0_4 = arith.constant 0 : index
    %2 = vector.load %arg3[%c0_2, %c0_3, %c0_4] : memref<1x8x128xbf16, #tpu.memory_space<vmem>>, vector<1x8x128xbf16>
    %3 = vector.shape_cast %2 : vector<1x8x128xbf16> to vector<8x128xbf16>
    %c0_5 = arith.constant 0 : index
    %c0_6 = arith.constant 0 : index
    %4 = vector.load %arg4[%c0_5, %c0_6] : memref<128x128xbf16, #tpu.memory_space<vmem>>, vector<128x128xbf16>
    %cst = arith.constant dense<0.000000e+00> : vector<8x128xf32>
    %5 = tpu.matmul %1, %4, %cst {dimension_numbers = #tpu.dot_dimension_numbers<[1], [0], [0], [1], [0, 0, 1, 1], [], []>} : vector<8x128xbf16>, vector<128x128xbf16>, vector<8x128xf32> -> vector<8x128xf32>
    %c0_7 = arith.constant 0 : index
    %c0_8 = arith.constant 0 : index
    %6 = vector.load %arg5[%c0_7, %c0_8] : memref<1x128xf32, #tpu.memory_space<vmem>>, vector<1x128xf32>
    %7 = vector.broadcast %6 : vector<1x128xf32> to vector<8x128xf32>
    %8 = arith.addf %5, %7 : vector<8x128xf32>
    %c0_9 = arith.constant 0 : index
    %c0_10 = arith.constant 0 : index
    %9 = vector.load %arg6[%c0_9, %c0_10] : memref<128x256xbf16, #tpu.memory_space<vmem>>, vector<128x256xbf16>
    %cst_11 = arith.constant dense<0.000000e+00> : vector<8x256xf32>
    %10 = tpu.matmul %3, %9, %cst_11 {dimension_numbers = #tpu.dot_dimension_numbers<[1], [0], [0], [1], [0, 0, 1, 1], [], []>} : vector<8x128xbf16>, vector<128x256xbf16>, vector<8x256xf32> -> vector<8x256xf32>
    %c0_12 = arith.constant 0 : index
    %c0_13 = arith.constant 0 : index
    %11 = vector.load %arg7[%c0_12, %c0_13] : memref<1x256xf32, #tpu.memory_space<vmem>>, vector<1x256xf32>
    %12 = vector.broadcast %11 : vector<1x256xf32> to vector<8x256xf32>
    %13 = arith.addf %10, %12 : vector<8x256xf32>
    %14 = vector.extract_strided_slice %13 {offsets = [0, 0], sizes = [8, 128], strides = [1, 1]} : vector<8x256xf32> to vector<8x128xf32>
    %15 = vector.extract_strided_slice %13 {offsets = [0, 128], sizes = [8, 128], strides = [1, 1]} : vector<8x256xf32> to vector<8x128xf32>
    %16 = vector.extract_strided_slice %8 {offsets = [0, 0], sizes = [8, 32], strides = [1, 1]} : vector<8x128xf32> to vector<8x32xf32>
    %17 = arith.truncf %16 : vector<8x32xf32> to vector<8x32xbf16>
    %c0_14 = arith.constant 0 : index
    %c0_15 = arith.constant 0 : index
    %c0_16 = arith.constant 0 : index
    %18 = vector.load %arg13[%c0_14, %c0_15, %c0_16] : memref<4x8x32xbf16, #tpu.memory_space<vmem>>, vector<1x8x32xbf16>
    %19 = vector.shape_cast %18 : vector<1x8x32xbf16> to vector<8x32xbf16>
    %20 = vector.shape_cast %17 : vector<8x32xbf16> to vector<1x8x32xbf16>
    tpu.vector_store %arg13[%c0_14, %c0_15, %c0_16], %20 {strides = array<i32>} : memref<4x8x32xbf16, #tpu.memory_space<vmem>>, vector<1x8x32xbf16>,
    %21 = vector.extract_strided_slice %14 {offsets = [0, 0], sizes = [8, 32], strides = [1, 1]} : vector<8x128xf32> to vector<8x32xf32>
    %22 = arith.truncf %21 : vector<8x32xf32> to vector<8x32xbf16>
    %c0_17 = arith.constant 0 : index
    %c0_18 = arith.constant 0 : index
    %c0_19 = arith.constant 0 : index
    %23 = vector.load %arg14[%c0_17, %c0_18, %c0_19] : memref<4x8x32xbf16, #tpu.memory_space<vmem>>, vector<1x8x32xbf16>
    %24 = vector.shape_cast %23 : vector<1x8x32xbf16> to vector<8x32xbf16>
    %25 = vector.shape_cast %22 : vector<8x32xbf16> to vector<1x8x32xbf16>
    tpu.vector_store %arg14[%c0_17, %c0_18, %c0_19], %25 {strides = array<i32>} : memref<4x8x32xbf16, #tpu.memory_space<vmem>>, vector<1x8x32xbf16>,
    %26 = vector.extract_strided_slice %15 {offsets = [0, 0], sizes = [8, 32], strides = [1, 1]} : vector<8x128xf32> to vector<8x32xf32>
    %27 = arith.truncf %26 : vector<8x32xf32> to vector<8x32xbf16>
    %c0_20 = arith.constant 0 : index
    %c0_21 = arith.constant 0 : index
    %c0_22 = arith.constant 0 : index
    %28 = vector.load %arg15[%c0_20, %c0_21, %c0_22] : memref<4x8x32xbf16, #tpu.memory_space<vmem>>, vector<1x8x32xbf16>
    %29 = vector.shape_cast %28 : vector<1x8x32xbf16> to vector<8x32xbf16>
    %30 = vector.shape_cast %27 : vector<8x32xbf16> to vector<1x8x32xbf16>
    tpu.vector_store %arg15[%c0_20, %c0_21, %c0_22], %30 {strides = array<i32>} : memref<4x8x32xbf16, #tpu.memory_space<vmem>>, vector<1x8x32xbf16>,
    %31 = vector.extract_strided_slice %8 {offsets = [0, 32], sizes = [8, 32], strides = [1, 1]} : vector<8x128xf32> to vector<8x32xf32>
    %32 = arith.truncf %31 : vector<8x32xf32> to vector<8x32xbf16>
    %c1 = arith.constant 1 : index
    %c0_23 = arith.constant 0 : index
    %c0_24 = arith.constant 0 : index
    %33 = vector.load %arg13[%c1, %c0_23, %c0_24] : memref<4x8x32xbf16, #tpu.memory_space<vmem>>, vector<1x8x32xbf16>
    %34 = vector.shape_cast %33 : vector<1x8x32xbf16> to vector<8x32xbf16>
    %35 = vector.shape_cast %32 : vector<8x32xbf16> to vector<1x8x32xbf16>
    tpu.vector_store %arg13[%c1, %c0_23, %c0_24], %35 {strides = array<i32>} : memref<4x8x32xbf16, #tpu.memory_space<vmem>>, vector<1x8x32xbf16>,
    %36 = vector.extract_strided_slice %14 {offsets = [0, 32], sizes = [8, 32], strides = [1, 1]} : vector<8x128xf32> to vector<8x32xf32>
    %37 = arith.truncf %36 : vector<8x32xf32> to vector<8x32xbf16>
    %c1_25 = arith.constant 1 : index
    %c0_26 = arith.constant 0 : index
    %c0_27 = arith.constant 0 : index
    %38 = vector.load %arg14[%c1_25, %c0_26, %c0_27] : memref<4x8x32xbf16, #tpu.memory_space<vmem>>, vector<1x8x32xbf16>
    %39 = vector.shape_cast %38 : vector<1x8x32xbf16> to vector<8x32xbf16>
    %40 = vector.shape_cast %37 : vector<8x32xbf16> to vector<1x8x32xbf16>
    tpu.vector_store %arg14[%c1_25, %c0_26, %c0_27], %40 {strides = array<i32>} : memref<4x8x32xbf16, #tpu.memory_space<vmem>>, vector<1x8x32xbf16>,
    %41 = vector.extract_strided_slice %15 {offsets = [0, 32], sizes = [8, 32], strides = [1, 1]} : vector<8x128xf32> to vector<8x32xf32>
    %42 = arith.truncf %41 : vector<8x32xf32> to vector<8x32xbf16>
    %c1_28 = arith.constant 1 : index
    %c0_29 = arith.constant 0 : index
    %c0_30 = arith.constant 0 : index
    %43 = vector.load %arg15[%c1_28, %c0_29, %c0_30] : memref<4x8x32xbf16, #tpu.memory_space<vmem>>, vector<1x8x32xbf16>
    %44 = vector.shape_cast %43 : vector<1x8x32xbf16> to vector<8x32xbf16>
    %45 = vector.shape_cast %42 : vector<8x32xbf16> to vector<1x8x32xbf16>
    tpu.vector_store %arg15[%c1_28, %c0_29, %c0_30], %45 {strides = array<i32>} : memref<4x8x32xbf16, #tpu.memory_space<vmem>>, vector<1x8x32xbf16>,
    %46 = vector.extract_strided_slice %8 {offsets = [0, 64], sizes = [8, 32], strides = [1, 1]} : vector<8x128xf32> to vector<8x32xf32>
    %47 = arith.truncf %46 : vector<8x32xf32> to vector<8x32xbf16>
    %c2 = arith.constant 2 : index
    %c0_31 = arith.constant 0 : index
    %c0_32 = arith.constant 0 : index
    %48 = vector.load %arg13[%c2, %c0_31, %c0_32] : memref<4x8x32xbf16, #tpu.memory_space<vmem>>, vector<1x8x32xbf16>
    %49 = vector.shape_cast %48 : vector<1x8x32xbf16> to vector<8x32xbf16>
    %50 = vector.shape_cast %47 : vector<8x32xbf16> to vector<1x8x32xbf16>
    tpu.vector_store %arg13[%c2, %c0_31, %c0_32], %50 {strides = array<i32>} : memref<4x8x32xbf16, #tpu.memory_space<vmem>>, vector<1x8x32xbf16>,
    %51 = vector.extract_strided_slice %14 {offsets = [0, 64], sizes = [8, 32], strides = [1, 1]} : vector<8x128xf32> to vector<8x32xf32>
    %52 = arith.truncf %51 : vector<8x32xf32> to vector<8x32xbf16>
    %c2_33 = arith.constant 2 : index
    %c0_34 = arith.constant 0 : index
    %c0_35 = arith.constant 0 : index
    %53 = vector.load %arg14[%c2_33, %c0_34, %c0_35] : memref<4x8x32xbf16, #tpu.memory_space<vmem>>, vector<1x8x32xbf16>
    %54 = vector.shape_cast %53 : vector<1x8x32xbf16> to vector<8x32xbf16>
    %55 = vector.shape_cast %52 : vector<8x32xbf16> to vector<1x8x32xbf16>
    tpu.vector_store %arg14[%c2_33, %c0_34, %c0_35], %55 {strides = array<i32>} : memref<4x8x32xbf16, #tpu.memory_space<vmem>>, vector<1x8x32xbf16>,
    %56 = vector.extract_strided_slice %15 {offsets = [0, 64], sizes = [8, 32], strides = [1, 1]} : vector<8x128xf32> to vector<8x32xf32>
    %57 = arith.truncf %56 : vector<8x32xf32> to vector<8x32xbf16>
    %c2_36 = arith.constant 2 : index
    %c0_37 = arith.constant 0 : index
    %c0_38 = arith.constant 0 : index
    %58 = vector.load %arg15[%c2_36, %c0_37, %c0_38] : memref<4x8x32xbf16, #tpu.memory_space<vmem>>, vector<1x8x32xbf16>
    %59 = vector.shape_cast %58 : vector<1x8x32xbf16> to vector<8x32xbf16>
    %60 = vector.shape_cast %57 : vector<8x32xbf16> to vector<1x8x32xbf16>
    tpu.vector_store %arg15[%c2_36, %c0_37, %c0_38], %60 {strides = array<i32>} : memref<4x8x32xbf16, #tpu.memory_space<vmem>>, vector<1x8x32xbf16>,
    %61 = vector.extract_strided_slice %8 {offsets = [0, 96], sizes = [8, 32], strides = [1, 1]} : vector<8x128xf32> to vector<8x32xf32>
    %62 = arith.truncf %61 : vector<8x32xf32> to vector<8x32xbf16>
    %c3 = arith.constant 3 : index
    %c0_39 = arith.constant 0 : index
    %c0_40 = arith.constant 0 : index
    %63 = vector.load %arg13[%c3, %c0_39, %c0_40] : memref<4x8x32xbf16, #tpu.memory_space<vmem>>, vector<1x8x32xbf16>
    %64 = vector.shape_cast %63 : vector<1x8x32xbf16> to vector<8x32xbf16>
    %65 = vector.shape_cast %62 : vector<8x32xbf16> to vector<1x8x32xbf16>
    tpu.vector_store %arg13[%c3, %c0_39, %c0_40], %65 {strides = array<i32>} : memref<4x8x32xbf16, #tpu.memory_space<vmem>>, vector<1x8x32xbf16>,
    %66 = vector.extract_strided_slice %14 {offsets = [0, 96], sizes = [8, 32], strides = [1, 1]} : vector<8x128xf32> to vector<8x32xf32>
    %67 = arith.truncf %66 : vector<8x32xf32> to vector<8x32xbf16>
    %c3_41 = arith.constant 3 : index
    %c0_42 = arith.constant 0 : index
    %c0_43 = arith.constant 0 : index
    %68 = vector.load %arg14[%c3_41, %c0_42, %c0_43] : memref<4x8x32xbf16, #tpu.memory_space<vmem>>, vector<1x8x32xbf16>
    %69 = vector.shape_cast %68 : vector<1x8x32xbf16> to vector<8x32xbf16>
    %70 = vector.shape_cast %67 : vector<8x32xbf16> to vector<1x8x32xbf16>
    tpu.vector_store %arg14[%c3_41, %c0_42, %c0_43], %70 {strides = array<i32>} : memref<4x8x32xbf16, #tpu.memory_space<vmem>>, vector<1x8x32xbf16>,
    %71 = vector.extract_strided_slice %15 {offsets = [0, 96], sizes = [8, 32], strides = [1, 1]} : vector<8x128xf32> to vector<8x32xf32>
    %72 = arith.truncf %71 : vector<8x32xf32> to vector<8x32xbf16>
    %c3_44 = arith.constant 3 : index
    %c0_45 = arith.constant 0 : index
    %c0_46 = arith.constant 0 : index
    %73 = vector.load %arg15[%c3_44, %c0_45, %c0_46] : memref<4x8x32xbf16, #tpu.memory_space<vmem>>, vector<1x8x32xbf16>
    %74 = vector.shape_cast %73 : vector<1x8x32xbf16> to vector<8x32xbf16>
    %75 = vector.shape_cast %72 : vector<8x32xbf16> to vector<1x8x32xbf16>
    tpu.vector_store %arg15[%c3_44, %c0_45, %c0_46], %75 {strides = array<i32>} : memref<4x8x32xbf16, #tpu.memory_space<vmem>>, vector<1x8x32xbf16>,
    %c8_i32 = arith.constant 8 : i32
    %76 = arith.muli %arg1, %c8_i32 : i32
    %77 = tpu.iota {dimensions = array<i32: 0>} : vector<8x8xi32>
    %78 = vector.broadcast %76 : i32 to vector<8x8xi32>
    %79 = arith.addi %77, %78 : vector<8x8xi32>
    %80 = tpu.iota {dimensions = array<i32: 1>} : vector<8x8xi32>
    %81 = arith.cmpi sge, %79, %80 : vector<8x8xi32>
    %c0_47 = arith.constant 0 : index
    %c0_48 = arith.constant 0 : index
    %c0_49 = arith.constant 0 : index
    %82 = vector.load %arg13[%c0_47, %c0_48, %c0_49] : memref<4x8x32xbf16, #tpu.memory_space<vmem>>, vector<4x8x32xbf16>
    %c0_50 = arith.constant 0 : index
    %c0_51 = arith.constant 0 : index
    %c0_52 = arith.constant 0 : index
    %83 = vector.load %arg14[%c0_50, %c0_51, %c0_52] : memref<4x8x32xbf16, #tpu.memory_space<vmem>>, vector<4x8x32xbf16>
    %c0_53 = arith.constant 0 : index
    %c0_54 = arith.constant 0 : index
    %c0_55 = arith.constant 0 : index
    %84 = vector.load %arg15[%c0_53, %c0_54, %c0_55] : memref<4x8x32xbf16, #tpu.memory_space<vmem>>, vector<4x8x32xbf16>
    "tpu.trace_start"() <{level = 10 : i32, message = "hqd,hkd->hqk"}> : () -> ()
    %cst_56 = arith.constant dense<0.000000e+00> : vector<4x8x8xf32>
    %85 = tpu.matmul %82, %83, %cst_56 {dimension_numbers = #tpu.dot_dimension_numbers<[2], [2], [1], [1], [0, 0, 0, 1, 1, 1], [0], [0]>} : vector<4x8x32xbf16>, vector<4x8x32xbf16>, vector<4x8x8xf32> -> vector<4x8x8xf32>
    "tpu.trace_stop"() : () -> ()
    %86 = vector.shape_cast %81 : vector<8x8xi1> to vector<1x8x8xi1>
    %cst_57 = arith.constant -1.000000e+20 : f32
    %87 = vector.shape_cast %86 : vector<1x8x8xi1> to vector<1x8x8xi1>
    %88 = vector.broadcast %87 : vector<1x8x8xi1> to vector<4x8x8xi1>
    %89 = vector.broadcast %cst_57 : f32 to vector<4x8x8xf32>
    %90 = arith.select %88, %85, %89 : vector<4x8x8xi1>, vector<4x8x8xf32>
    %cst_58 = arith.constant dense<0xFF800000> : vector<4x8xf32>
    %91 = vector.multi_reduction <maximumf>, %90, %cst_58 [2] : vector<4x8x8xf32> to vector<4x8xf32>
    %92 = vector.shape_cast %91 : vector<4x8xf32> to vector<4x8x1xf32>
    %93 = vector.broadcast %92 : vector<4x8x1xf32> to vector<4x8x8xf32>
    %94 = arith.subf %90, %93 : vector<4x8x8xf32>
    %95 = math.exp %94 : vector<4x8x8xf32>
    %cst_59 = arith.constant dense<0.000000e+00> : vector<4x8xf32>
    %96 = vector.multi_reduction <add>, %95, %cst_59 [2] : vector<4x8x8xf32> to vector<4x8xf32>
    %97 = vector.shape_cast %96 : vector<4x8xf32> to vector<4x8x1xf32>
    %98 = tpu.reciprocal %97 {approx = true} : vector<4x8x1xf32> -> vector<4x8x1xf32>
    %99 = vector.broadcast %98 : vector<4x8x1xf32> to vector<4x8x8xf32>
    %100 = arith.mulf %95, %99 : vector<4x8x8xf32>
    %101 = arith.truncf %100 : vector<4x8x8xf32> to vector<4x8x8xbf16>
    "tpu.trace_start"() <{level = 10 : i32, message = "hqk,hkd->hqd"}> : () -> ()
    %cst_60 = arith.constant dense<0.000000e+00> : vector<4x8x32xf32>
    %102 = tpu.matmul %101, %84, %cst_60 {dimension_numbers = #tpu.dot_dimension_numbers<[2], [1], [1], [2], [0, 0, 0, 1, 1, 2], [0], [0]>} : vector<4x8x8xbf16>, vector<4x8x32xbf16>, vector<4x8x32xf32> -> vector<4x8x32xf32>
    "tpu.trace_stop"() : () -> ()
    %103 = vector.extract_strided_slice %102 {offsets = [0, 0, 0], sizes = [1, 8, 32], strides = [1, 1, 1]} : vector<4x8x32xf32> to vector<1x8x32xf32>
    %104 = vector.shape_cast %103 : vector<1x8x32xf32> to vector<8x32xf32>
    %105 = arith.truncf %104 : vector<8x32xf32> to vector<8x32xbf16>
    %c0_61 = arith.constant 0 : index
    %c0_62 = arith.constant 0 : index
    %106 = vector.load %arg16[%c0_61, %c0_62] : memref<8x128xbf16, #tpu.memory_space<vmem>>, vector<8x32xbf16>
    tpu.vector_store %arg16[%c0_61, %c0_62], %105 {strides = array<i32>} : memref<8x128xbf16, #tpu.memory_space<vmem>>, vector<8x32xbf16>,
    %107 = vector.extract_strided_slice %102 {offsets = [1, 0, 0], sizes = [1, 8, 32], strides = [1, 1, 1]} : vector<4x8x32xf32> to vector<1x8x32xf32>
    %108 = vector.shape_cast %107 : vector<1x8x32xf32> to vector<8x32xf32>
    %109 = arith.truncf %108 : vector<8x32xf32> to vector<8x32xbf16>
    %c0_63 = arith.constant 0 : index
    %c32 = arith.constant 32 : index
    %110 = vector.load %arg16[%c0_63, %c32] : memref<8x128xbf16, #tpu.memory_space<vmem>>, vector<8x32xbf16>
    tpu.vector_store %arg16[%c0_63, %c32], %109 {strides = array<i32>} : memref<8x128xbf16, #tpu.memory_space<vmem>>, vector<8x32xbf16>,
    %111 = vector.extract_strided_slice %102 {offsets = [2, 0, 0], sizes = [1, 8, 32], strides = [1, 1, 1]} : vector<4x8x32xf32> to vector<1x8x32xf32>
    %112 = vector.shape_cast %111 : vector<1x8x32xf32> to vector<8x32xf32>
    %113 = arith.truncf %112 : vector<8x32xf32> to vector<8x32xbf16>
    %c0_64 = arith.constant 0 : index
    %c64 = arith.constant 64 : index
    %114 = vector.load %arg16[%c0_64, %c64] : memref<8x128xbf16, #tpu.memory_space<vmem>>, vector<8x32xbf16>
    tpu.vector_store %arg16[%c0_64, %c64], %113 {strides = array<i32>} : memref<8x128xbf16, #tpu.memory_space<vmem>>, vector<8x32xbf16>,
    %115 = vector.extract_strided_slice %102 {offsets = [3, 0, 0], sizes = [1, 8, 32], strides = [1, 1, 1]} : vector<4x8x32xf32> to vector<1x8x32xf32>
    %116 = vector.shape_cast %115 : vector<1x8x32xf32> to vector<8x32xf32>
    %117 = arith.truncf %116 : vector<8x32xf32> to vector<8x32xbf16>
    %c0_65 = arith.constant 0 : index
    %c96 = arith.constant 96 : index
    %118 = vector.load %arg16[%c0_65, %c96] : memref<8x128xbf16, #tpu.memory_space<vmem>>, vector<8x32xbf16>
    tpu.vector_store %arg16[%c0_65, %c96], %117 {strides = array<i32>} : memref<8x128xbf16, #tpu.memory_space<vmem>>, vector<8x32xbf16>,
    %c0_66 = arith.constant 0 : index
    %c0_67 = arith.constant 0 : index
    %119 = vector.load %arg16[%c0_66, %c0_67] : memref<8x128xbf16, #tpu.memory_space<vmem>>, vector<8x128xbf16>
    %c0_68 = arith.constant 0 : index
    %c0_69 = arith.constant 0 : index
    %120 = vector.load %arg8[%c0_68, %c0_69] : memref<128x128xbf16, #tpu.memory_space<vmem>>, vector<128x128xbf16>
    %cst_70 = arith.constant dense<0.000000e+00> : vector<8x128xf32>
    %121 = tpu.matmul %119, %120, %cst_70 {dimension_numbers = #tpu.dot_dimension_numbers<[1], [0], [0], [1], [0, 0, 1, 1], [], []>} : vector<8x128xbf16>, vector<128x128xbf16>, vector<8x128xf32> -> vector<8x128xf32>
    %c0_71 = arith.constant 0 : index
    %c0_72 = arith.constant 0 : index
    %122 = vector.load %arg9[%c0_71, %c0_72] : memref<1x128xf32, #tpu.memory_space<vmem>>, vector<1x128xf32>
    %123 = vector.broadcast %122 : vector<1x128xf32> to vector<8x128xf32>
    %124 = arith.addf %121, %123 : vector<8x128xf32>
    %125 = arith.extf %1 : vector<8x128xbf16> to vector<8x128xf32>
    %126 = arith.addf %124, %125 : vector<8x128xf32>
    %cst_73 = arith.constant dense<0.000000e+00> : vector<8xf32>
    %127 = vector.multi_reduction <add>, %126, %cst_73 [1] : vector<8x128xf32> to vector<8xf32>
    %128 = vector.shape_cast %127 : vector<8xf32> to vector<8x1xf32>
    %cst_74 = arith.constant 1.280000e+02 : f32
    %129 = vector.broadcast %cst_74 : f32 to vector<8x1xf32>
    %130 = arith.divf %128, %129 : vector<8x1xf32>
    %131 = vector.broadcast %130 : vector<8x1xf32> to vector<8x128xf32>
    %132 = arith.subf %126, %131 : vector<8x128xf32>
    %133 = arith.mulf %132, %132 : vector<8x128xf32>
    %cst_75 = arith.constant dense<0.000000e+00> : vector<8xf32>
    %134 = vector.multi_reduction <add>, %133, %cst_75 [1] : vector<8x128xf32> to vector<8xf32>
    %135 = vector.shape_cast %134 : vector<8xf32> to vector<8x1xf32>
    %cst_76 = arith.constant 1.280000e+02 : f32
    %136 = vector.broadcast %cst_76 : f32 to vector<8x1xf32>
    %137 = arith.divf %135, %136 : vector<8x1xf32>
    %cst_77 = arith.constant 9.99999974E-6 : f32
    %138 = vector.broadcast %cst_77 : f32 to vector<8x1xf32>
    %139 = arith.addf %137, %138 : vector<8x1xf32>
    %140 = math.rsqrt %139 : vector<8x1xf32>
    %141 = vector.broadcast %130 : vector<8x1xf32> to vector<8x128xf32>
    %142 = arith.subf %126, %141 : vector<8x128xf32>
    %143 = vector.broadcast %140 : vector<8x1xf32> to vector<8x128xf32>
    %144 = arith.mulf %142, %143 : vector<8x128xf32>
    %c0_78 = arith.constant 0 : index
    %c0_79 = arith.constant 0 : index
    %145 = vector.load %arg10[%c0_78, %c0_79] : memref<1x128xf32, #tpu.memory_space<vmem>>, vector<1x128xf32>
    %146 = vector.broadcast %145 : vector<1x128xf32> to vector<8x128xf32>
    %147 = arith.mulf %144, %146 : vector<8x128xf32>
    %c0_80 = arith.constant 0 : index
    %c0_81 = arith.constant 0 : index
    %148 = vector.load %arg11[%c0_80, %c0_81] : memref<1x128xf32, #tpu.memory_space<vmem>>, vector<1x128xf32>
    %149 = vector.broadcast %148 : vector<1x128xf32> to vector<8x128xf32>
    %150 = arith.addf %147, %149 : vector<8x128xf32>
    %151 = arith.truncf %150 : vector<8x128xf32> to vector<8x128xbf16>
    %c0_82 = arith.constant 0 : index
    %c0_83 = arith.constant 0 : index
    %c0_84 = arith.constant 0 : index
    %152 = vector.load %arg12[%c0_82, %c0_83, %c0_84] : memref<1x8x128xbf16, #tpu.memory_space<vmem>>, vector<1x8x128xbf16>
    %153 = vector.shape_cast %152 : vector<1x8x128xbf16> to vector<8x128xbf16>
    %154 = vector.shape_cast %151 : vector<8x128xbf16> to vector<1x8x128xbf16>
    tpu.vector_store %arg12[%c0_82, %c0_83, %c0_84], %154 {strides = array<i32>} : memref<1x8x128xbf16, #tpu.memory_space<vmem>>, vector<1x8x128xbf16>,
    return
  }
  func.func @transform_0(%arg0: i32, %arg1: i32) -> (i32, i32, i32) {
    %c0_i32 = arith.constant 0 : i32
    %c0_i32_0 = arith.constant 0 : i32
    return %arg0, %arg1, %c0_i32 : i32, i32, i32
  }
  func.func @transform_1(%arg0: i32, %arg1: i32) -> (i32, i32, i32) {
    %c0_i32 = arith.constant 0 : i32
    %c0_i32_0 = arith.constant 0 : i32
    %c0_i32_1 = arith.constant 0 : i32
    return %arg0, %c0_i32, %c0_i32_0 : i32, i32, i32
  }
  func.func @transform_2(%arg0: i32, %arg1: i32) -> (i32, i32) {
    %c0_i32 = arith.constant 0 : i32
    %c0_i32_0 = arith.constant 0 : i32
    %c0_i32_1 = arith.constant 0 : i32
    return %c0_i32, %c0_i32_0 : i32, i32
  }
  func.func @transform_3(%arg0: i32, %arg1: i32) -> (i32, i32) {
    %c0_i32 = arith.constant 0 : i32
    %c0_i32_0 = arith.constant 0 : i32
    %c0_i32_1 = arith.constant 0 : i32
    return %c0_i32, %c0_i32_0 : i32, i32
  }
  func.func @transform_4(%arg0: i32, %arg1: i32) -> (i32, i32) {
    %c0_i32 = arith.constant 0 : i32
    %c0_i32_0 = arith.constant 0 : i32
    %c0_i32_1 = arith.constant 0 : i32
    return %c0_i32, %c0_i32_0 : i32, i32
  }
  func.func @transform_5(%arg0: i32, %arg1: i32) -> (i32, i32) {
    %c0_i32 = arith.constant 0 : i32
    %c0_i32_0 = arith.constant 0 : i32
    %c0_i32_1 = arith.constant 0 : i32
    return %c0_i32, %c0_i32_0 : i32, i32
  }
  func.func @transform_6(%arg0: i32, %arg1: i32) -> (i32, i32) {
    %c0_i32 = arith.constant 0 : i32
    %c0_i32_0 = arith.constant 0 : i32
    %c0_i32_1 = arith.constant 0 : i32
    return %c0_i32, %c0_i32_0 : i32, i32
  }
  func.func @transform_7(%arg0: i32, %arg1: i32) -> (i32, i32) {
    %c0_i32 = arith.constant 0 : i32
    %c0_i32_0 = arith.constant 0 : i32
    %c0_i32_1 = arith.constant 0 : i32
    return %c0_i32, %c0_i32_0 : i32, i32
  }
  func.func @transform_8(%arg0: i32, %arg1: i32) -> (i32, i32) {
    %c0_i32 = arith.constant 0 : i32
    %c0_i32_0 = arith.constant 0 : i32
    %c0_i32_1 = arith.constant 0 : i32
    return %c0_i32, %c0_i32_0 : i32, i32
  }
  func.func @transform_9(%arg0: i32, %arg1: i32) -> (i32, i32) {
    %c0_i32 = arith.constant 0 : i32
    %c0_i32_0 = arith.constant 0 : i32
    %c0_i32_1 = arith.constant 0 : i32
    return %c0_i32, %c0_i32_0 : i32, i32
  }
  func.func @transform_10(%arg0: i32, %arg1: i32) -> (i32, i32, i32) {
    %c0_i32 = arith.constant 0 : i32
    %c0_i32_0 = arith.constant 0 : i32
    return %arg0, %arg1, %c0_i32 : i32, i32, i32
  }
}

</mosaic_0001>

<bundles_post_ra>
// kernel: tpu_custom_call.1
= control target key start
LH: loop header
LB: loop body
LE: loop exit
PB: predicated region body
PF: predicated region fallthrough
CT: control target
= control target key end

     0   :  { %s2693_s0 = inlined_call_operand.hbm [shape: bf16[2,8,128], index: 0, kind: input, shape index: {}]   ;;  %s2694_s1 = inlined_call_operand.hbm [shape: bf16[2,8,128], index: 1, kind: input, shape index: {}]   ;;  %s2695_s2 = inlined_call_operand.hbm [shape: bf16[128,128], index: 2, kind: input, shape index: {}]   ;;  %s2696_s3 = inlined_call_operand.vmem [shape: f32[1,128], index: 3, kind: input, shape index: {}]   ;;  %s2697_s4 = inlined_call_operand.hbm [shape: bf16[128,256], index: 4, kind: input, shape index: {}]   ;;  %s2698_s5 = inlined_call_operand.vmem [shape: f32[1,256], index: 5, kind: input, shape index: {}]   ;;  %s2699_s6 = inlined_call_operand.hbm [shape: bf16[128,128], index: 6, kind: input, shape index: {}]   ;;  %s2700_s7 = inlined_call_operand.vmem [shape: f32[1,128], index: 7, kind: input, shape index: {}]   ;;  %s2701_s8 = inlined_call_operand.vmem [shape: f32[1,128], index: 8, kind: input, shape index: {}]   ;;  %s2702_s9 = inlined_call_operand.vmem [shape: f32[1,128], index: 9, kind: input, shape index: {}]   ;;  %s2703_s10 = inlined_call_operand.hbm [shape: bf16[2,8,128], index: 10, kind: output, shape index: {}]  }
   0x1   :  { %2714 = sst [smem:[#allocation24_spill]] %s2695_s2 }
   0x2   :  { %2715 = sst [smem:[#allocation25_spill]] %s2697_s4 }
   0x3   :  { %2716 = sst [smem:[#allocation26_spill]] %s2699_s6 }
   0x4   :  { %2717 = sst [smem:[#allocation27_spill]] %s2701_s8 }
   0x5   :  { %2718 = sst [smem:[#allocation28_spill]] %s2702_s9 }
   0x6   :  { %2719 = sst [smem:[#allocation29_spill]] %s2703_s10 }
   0x7   :  { %15 = vsyncpa [#allocation7], 0 }
   0x8   :  { %17 = vsyncpa [#allocation7 + $0x1], 0 }
   0x9   :  { %18 = vsyncpa [#allocation10], 0 }
   0xa   :  { %20 = vsyncpa [#allocation10 + $0x1], 0 }
   0xb   :  { %21 = vsyncpa [#allocation13], 0 }
   0xc   :  { %22 = vsyncpa [#allocation8], 0 }
   0xd   :  { %24 = vsyncpa [#allocation8 + $0x1], 0  ;;  %s2237_s13 = smov 0   ;;  %s2239_s14 = smov 0  }
   0xe   :  { %s2241_s15 = smov 0   ;;  %s2243_s16 = smov 0  }
   0xf   :  { %s2245_s17 = smov 0   ;;  %s2247_s18 = smov 0  }
  0x10 LB: > { %2720 = sst [smem:[#allocation21_spill]] %s2144_s13  ;;  %s2268_s19 = sadd.s32 4294967295, %s2164_s18   ;;  %s2164_s18 = sphi %s2247_s18, %s30_s18   ;;  %s2160_s17 = sphi %s2245_s17, %s2756_s17   ;;  %s2156_s16 = sphi %s2243_s16, %s2755_s16   ;;  %s2152_s15 = sphi %s2241_s15, %s2754_s15   ;;  %s2148_s14 = sphi %s2239_s14, %s2753_s14   ;;  %s2144_s13 = sphi %s2237_s13, %s2752_s13  }
  0x11   : > { %s1561_s20 = sadd.s32 4294967294, %s2164_s18   ;;  %p64_p0 = scmp.ne.s32.totalorder %s2148_s14, %s2144_s13 }
  0x12   : > { %p2705_p1 = scmp.eq.s32.totalorder %s2268_s19, 0  ;;  %p290_p3 = scmp.eq.s32.totalorder %s1561_s20, 1 }
  0x13   : > { %p1562_p5 = scmp.ge.s32.totalorder %s2164_s18, 1  ;;  %p297_p7 = scmp.lt.s32.totalorder %s2164_s18, 3 }
  0x14   : > { %p2277_p4 = por %p2705_p1, %p64_p0  ;;  %p2282_p6 = por %p290_p3, %p64_p0 }
  0x15   : > { %p2287_p8 = pnand %p1562_p5, %p297_p7  ;;  %s2166_s24 = smov [#allocation11]  }
  0x16   : > { %s2721_s21 = scalar_select %p2277_p4, 1, 0 }
  0x17   : > { %s2722_s22 = scalar_select %p2282_p6, 1, 0 }
  0x18   : > { %s2724_s23 = scalar_select %p2287_p8, 1, 0 }
  0x19   : > { %2723 = sst [smem:[#allocation22_spill]] %s2722_s22  ;;  %s309_s25 = sshll.u32 %s2166_s24, 4  ;;  %s2291_s25 = int_to_ptr.vmem [resolvable:$true] %s309_s25 }
  0x1a   : > { %p1778_p9 = pneg %p2287_p8  ;;  %s2167_s27 = smov [#allocation12]  }
  0x1b   : > { %s325_s28 = sshll.u32 %s2167_s27, 4  ;;  %s2726_s2 = sld [smem:[#allocation24_spill]]  ;;  %s2302_s28 = int_to_ptr.vmem [resolvable:$true] %s325_s28 }
  0x1c   : > { %p2298_p11 = pnand %p1778_p9, %p2705_p1 }
  0x1e   : > { %p2312_p13 = pneg %p2298_p11 }
  0x21   : > { %s1926_s11 = scalar_lea.hbm %s2726_s2, 1024 }
  0x22   : > { %p1927_p12 = scmp.ne.s32.totalorder %s2726_s2, %s1926_s11  ;;  %p1933_p5 = scmp.lt.u32.totalorder %s1926_s11, %s2726_s2 }
  0x24   : > { %p1929_p0 = pnand %p2312_p13, %p1927_p12 }
  0x26   : > { %p1930_p3 = pneg %p1929_p0 }
  0x28   : > { %p1935_p7 = pnand %p1933_p5, %p1930_p3 }
  0x2a   : > { %1938 = shalt.err (!%p1935_p7)
}
  0x2b   : > { %s1939_s29 = scalar_lea.vmem %s2291_s25, 1024  ;;  %p1947_p2 = scmp.lt.s32.totalorder %s2291_s25, %s2291_s25 }
  0x2c   : > { %p1940_p9 = scmp.ne.s32.totalorder %s2291_s25, %s1939_s29  ;;  %p1948_p6 = scmp.lt.s32.totalorder %s1939_s29, %s1939_s29 }
  0x2e   : > { %p1942_p10 = pnand %p1940_p9, %p2312_p13  ;;  %p1949_p12 = por %p1948_p6, %p1947_p2 }
  0x30   : > { %p1943_p1 = pneg %p1942_p10 }
  0x32   : > { %p1950_p0 = pnand %p1949_p12, %p1943_p1 }
  0x34   : > { %1953 = shalt.err (!%p1950_p0)
}
  0x35   : > { %s2708_s30 = smov 64   ;;  %s2709_s22 = smov 4  }
  0x36   : > { %1781 = dma.hbm_to_vmem [thread:$0]  (!%p2298_p11), %s2726_s2, 1024, %s2291_s25, [#allocation10], %s2708_s30, %s2708_s30, %s2709_s22  }
  0x37   : > { %s2728_s4 = sld [smem:[#allocation25_spill]] }
  0x3d   : > { %s1954_s29 = scalar_lea.hbm %s2728_s4, 2048 }
  0x3e   : > { %p1955_p1 = scmp.ne.s32.totalorder %s2728_s4, %s1954_s29  ;;  %p1961_p10 = scmp.lt.u32.totalorder %s1954_s29, %s2728_s4 }
  0x40   : > { %p1957_p2 = pnand %p1955_p1, %p2312_p13 }
  0x42   : > { %p1958_p6 = pneg %p1957_p2 }
  0x44   : > { %p1963_p3 = pnand %p1961_p10, %p1958_p6 }
  0x46   : > { %1966 = shalt.err (!%p1963_p3)
}
  0x47   : > { %s1967_s25 = scalar_lea.vmem %s2302_s28, 2048  ;;  %p1975_p12 = scmp.lt.s32.totalorder %s2302_s28, %s2302_s28 }
  0x48   : > { %p1968_p5 = scmp.ne.s32.totalorder %s2302_s28, %s1967_s25  ;;  %p1976_p0 = scmp.lt.s32.totalorder %s1967_s25, %s1967_s25 }
  0x4a   : > { %p1970_p7 = pnand %p1968_p5, %p2312_p13  ;;  %p1977_p1 = por %p1976_p0, %p1975_p12 }
  0x4c   : > { %p1971_p9 = pneg %p1970_p7 }
  0x4e   : > { %p1978_p2 = pnand %p1977_p1, %p1971_p9 }
  0x50   : > { %1981 = shalt.err (!%p1978_p2)
}
  0x51   : > { %s2170_s10 = smov 128   ;;  %s2171_s8 = smov 8  }
  0x52   : > { %1784 = dma.hbm_to_vmem [thread:$0]  (!%p2298_p11), %s2728_s4, 2048, %s2302_s28, [#allocation13], %s2170_s10, %s2170_s10, %s2171_s8  }
  0x53   : > { %s2172_s11 = smov [#allocation14]   ;;  %s2729_s6 = sld [smem:[#allocation26_spill]] }
  0x54   : > { %s341_s12 = sshll.u32 %s2172_s11, 4  ;;  %s342_s12 = int_to_ptr.vmem [resolvable:$true] %s341_s12 }
  0x59   : > { %s1982_s29 = scalar_lea.hbm %s2729_s6, 1024 }
  0x5a   : > { %p1983_p6 = scmp.ne.s32.totalorder %s2729_s6, %s1982_s29  ;;  %p1989_p5 = scmp.lt.u32.totalorder %s1982_s29, %s2729_s6 }
  0x5c   : > { %p1985_p10 = pnand %p1983_p6, %p2312_p13 }
  0x5e   : > { %p1986_p3 = pneg %p1985_p10 }
  0x60   : > { %p1991_p7 = pnand %p1989_p5, %p1986_p3 }
  0x62   : > { %1994 = shalt.err (!%p1991_p7)
}
  0x63   : > { %s1995_s28 = scalar_lea.vmem %s342_s12, 1024  ;;  %p2003_p1 = scmp.lt.s32.totalorder %s342_s12, %s342_s12 }
  0x64   : > { %p1996_p9 = scmp.ne.s32.totalorder %s342_s12, %s1995_s28  ;;  %p2004_p2 = scmp.lt.s32.totalorder %s1995_s28, %s1995_s28 }
  0x66   : > { %p1998_p12 = pnand %p1996_p9, %p2312_p13  ;;  %p2005_p4 = por %p2004_p2, %p2003_p1 }
  0x68   : > { %p1999_p0 = pneg %p1998_p12 }
  0x6a   : > { %p2006_p8 = pnand %p2005_p4, %p1999_p0 }
  0x6c   : > { %2009 = shalt.err (!%p2006_p8)
}
  0x6d   : > { %s2730_s30 = smov 4   ;;  %s2731_s10 = smov 64  }
  0x6e   : > { %1787 = dma.hbm_to_vmem [thread:$0]  (!%p2298_p11), %s2729_s6, 1024, %s342_s12, [#allocation13], %s2731_s10, %s2731_s10, %s2730_s30  }
  0x6f   : > { %s42_s24 = sadd.s32 1, %s2160_s17  ;;  %s51_s26 = sadd.s32 1, %s2152_s15 }
  0x70   : > { %p44_p4 = scmp.ge.s32.totalorder %s42_s24, 2  ;;  %p58_p8 = scmp.ne.s32.totalorder %s2152_s15, %s2148_s14 }
  0x71   : > { %p59_p13 = scmp.eq.s32.totalorder %s2164_s18, 0  ;;  %p2734_p10 = scmp.eq.s32.totalorder %s2268_s19, 1 }
  0x72   : > { %s2758_s24 = smov (%p44_p4, %s42_s24), 0  ;;  %p1802_p11 = scmp.lt.s32.totalorder %s2164_s18, 2 }
  0x73   : > { %2732 = sst [smem:[#allocation23_spill]] %s2758_s24  ;;  %p2387_p6 = por %p59_p13, %p58_p8 }
  0x74   : > { %p2393_p3 = por %p2734_p10, %p58_p8  ;;  %s46_s13 = ssub.s32 %s2160_s17, %s2758_s24 }
  0x75   : > { %p49_p5 = scmp.eq.s32.totalorder %s46_s13, 0  ;;  %s364_s11 = sand.u32 1, %s2152_s15  }
  0x76   : > { %s2735_s9 = scalar_select %p2393_p3, 1, 0 }
  0x77   : > { %s2401_s12 = sshll.u32 %s364_s11, 2  ;;  %s1568_s27 = sshll.u32 %s2160_s17, 6 }
  0x78   : > { %s2404_s20 = scalar_select %p49_p5, %s2152_s15, %s51_s26  }
  0x79   : > { %s2410_s28 = scalar_lea.hbm %s2693_s0, %s1568_s27  ;;  %s368_s30 = scalar_lea.vmem [#allocation6], %s2401_s12 }
  0x7a   : > { %s376_s10 = sshll.u32 %s368_s30, 4  ;;  %p2417_p7 = pnand %p1802_p11, %p2387_p6  ;;  %s2413_s10 = int_to_ptr.vmem [resolvable:$true] %s376_s10 }
  0x7b   : > { %s2424_s13 = scalar_lea.hbm %s2694_s1, %s1568_s27  ;;  %s383_s29 = sand.u32 1, %s2164_s18  }
  0x7c   : > { %s365_s25 = scalar_lea.sflag [#allocation7], %s364_s11  ;;  %s2010_s4 = scalar_lea.hbm %s2410_s28, 64 }
  0x7d   : > { %p2011_p9 = scmp.ne.s32.totalorder %s2410_s28, %s2010_s4  ;;  %p2012_p12 = pneg %p2417_p7 }
  0x7e   : > { %s2015_s6 = scalar_lea.hbm %s2693_s0, 128  ;;  %p2016_p2 = scmp.lt.u32.totalorder %s2410_s28, %s2693_s0 }
  0x7f   : > { %p2013_p0 = pnand %p2012_p12, %p2011_p9  ;;  %p2017_p4 = scmp.lt.u32.totalorder %s2015_s6, %s2010_s4 }
  0x80   : > { %p2019_p13 = scmp.lt.u32.totalorder %s2010_s4, %s2410_s28 }
  0x81   : > { %p2014_p1 = pneg %p2013_p0  ;;  %p2018_p8 = por %p2017_p4, %p2016_p2 }
  0x83   : > { %p2020_p6 = por %p2019_p13, %p2018_p8 }
  0x85   : > { %p2021_p10 = pnand %p2020_p6, %p2014_p1 }
  0x87   : > { %2024 = shalt.err (!%p2021_p10)
}
  0x88   : > { %s2025_s11 = scalar_lea.vmem %s2413_s10, 64  ;;  %s2173_s27 = smov [#allocation6]  }
  0x89   : > { %p2026_p11 = scmp.ne.s32.totalorder %s2413_s10, %s2025_s11  ;;  %s2030_s26 = sshll.u32 %s2173_s27, 4  ;;  %s2031_s26 = int_to_ptr.vmem [resolvable:$false] %s2030_s26 }
  0x8a   : > { %s2032_s24 = scalar_lea.vmem %s2031_s26, 128  ;;  %p2033_p0 = scmp.lt.s32.totalorder %s2413_s10, %s2031_s26 }
  0x8b   : > { %p2028_p5 = pnand %p2026_p11, %p2012_p12  ;;  %p2034_p2 = scmp.lt.s32.totalorder %s2032_s24, %s2025_s11 }
  0x8d   : > { %p2029_p9 = pneg %p2028_p5  ;;  %p2035_p4 = por %p2034_p2, %p2033_p0 }
  0x8f   : > { %p2036_p8 = pnand %p2035_p4, %p2029_p9 }
  0x91   : > { %2039 = shalt.err (!%p2036_p8)
}
  0x92   : > { %1791 = dma.hbm_to_vmem [thread:$0]  (!%p2417_p7), %s2410_s28, 64, %s2413_s10, %s365_s25  }
  0x93   : > { %s387_s4 = scalar_lea.vmem [#allocation9], %s2401_s12  ;;  %s384_s8 = scalar_lea.sflag [#allocation10], %s383_s29 }
  0x94   : > { %s394_s6 = sshll.u32 %s387_s4, 4  ;;  %s2040_s30 = scalar_lea.hbm %s2424_s13, 64  ;;  %s395_s6 = int_to_ptr.vmem [resolvable:$true] %s394_s6 }
  0x95   : > { %p2041_p1 = scmp.ne.s32.totalorder %s2424_s13, %s2040_s30  ;;  %s2045_s27 = scalar_lea.hbm %s2694_s1, 128 }
  0x96   : > { %p2046_p10 = scmp.lt.u32.totalorder %s2424_s13, %s2694_s1  ;;  %p2047_p11 = scmp.lt.u32.totalorder %s2045_s27, %s2040_s30 }
  0x97   : > { %p2043_p13 = pnand %p2041_p1, %p2012_p12  ;;  %p2049_p9 = scmp.lt.u32.totalorder %s2040_s30, %s2424_s13 }
  0x98   : > { %p2048_p5 = por %p2047_p11, %p2046_p10 }
  0x99   : > { %p2044_p6 = pneg %p2043_p13 }
  0x9a   : > { %p2050_p0 = por %p2049_p9, %p2048_p5 }
  0x9c   : > { %p2051_p2 = pnand %p2050_p0, %p2044_p6 }
  0x9e   : > { %2054 = shalt.err (!%p2051_p2)
}
  0x9f   : > { %s2055_s12 = scalar_lea.vmem %s395_s6, 64  ;;  %s2174_s28 = smov [#allocation9]  }
  0xa0   : > { %p2056_p4 = scmp.ne.s32.totalorder %s395_s6, %s2055_s12  ;;  %s2060_s10 = sshll.u32 %s2174_s28, 4  ;;  %s2061_s10 = int_to_ptr.vmem [resolvable:$false] %s2060_s10 }
  0xa1   : > { %s2062_s29 = scalar_lea.vmem %s2061_s10, 128  ;;  %p2063_p13 = scmp.lt.s32.totalorder %s395_s6, %s2061_s10 }
  0xa2   : > { %p2058_p8 = pnand %p2056_p4, %p2012_p12  ;;  %p2064_p3 = scmp.lt.s32.totalorder %s2062_s29, %s2055_s12 }
  0xa4   : > { %p2059_p1 = pneg %p2058_p8  ;;  %p2065_p10 = por %p2064_p3, %p2063_p13 }
  0xa6   : > { %p2066_p11 = pnand %p2065_p10, %p2059_p1 }
  0xa8   : > { %2069 = shalt.err (!%p2066_p11)
}
  0xa9   : > { %1794 = dma.hbm_to_vmem [thread:$0]  (!%p2417_p7), %s2424_s13, 64, %s395_s6, %s384_s8  }
  0xaa   : > { %p2737_p6 = scmp.ne.s32.totalorder %s2724_s23, 0 }
  0xab   : > { %s2477_s25 = sand.u32 (!%p2737_p6), 1, %s2148_s14   ;;  %p2738_p3 = scmp.ne.s32.totalorder (!%p2737_p6), %s2721_s21, 0 }
  0xac   : > { %403 = sbr.rel (%p2737_p6) target bundleno = 1997 (0x7cd), region = 60  ;;  %s2480_s4 = sshll.u32 (!%p2737_p6), %s2477_s25, 2 }
  0xad   : > { %s406_s30 = scalar_lea.sflag (!%p2737_p6), [#allocation7], %s2477_s25  ;;  %s409_s22 = scalar_lea.vmem (!%p2737_p6), [#allocation6], %s2480_s4 }
  0xb3   : > { %2123 = dma.done.wait (%p2738_p3), %s406_s30, 64  }
  0xb4   : > { %2125 = vsyncadd (%p2738_p3), %s406_s30, 4294967232  ;;  %s414_s23 = sand.u32 1, %s2268_s19   ;;  %s418_s13 = scalar_lea.vmem [#allocation9], %s2480_s4 }
  0xb5   : > { %s415_s2 = scalar_lea.sflag [#allocation10], %s414_s23 }
  0xb6   : > { %2127 = dma.done.wait (%p2738_p3), %s415_s2, 64  }
  0xb7   : > { %2129 = vsyncadd (%p2738_p3), %s415_s2, 4294967232  ;;  %p2739_p7 = scmp.eq.s32.totalorder %s2268_s19, 0 }
  0xb9   : > { %2131 = dma.done.wait (%p2739_p7), [#allocation10], 1024   ;;  %p2740_p12 = pmov %p2739_p7 }
  0xba   : > { %p2741_p5 = pmov %p2739_p7 }
  0xbb   : > { %2133 = vsyncadd (%p2740_p12), [#allocation10], 4294966272 }
  0xbc   : > { %2135 = dma.done.wait (%p2741_p5), [#allocation13], 3072   ;;  %p2742_p9 = pmov %p2741_p5 }
  0xbd   : > { %v2175_v0 = vmov 0.0   ;;  %v2176_v1 = vmov 0   ;;  %vm2177_vm0 = vmmov 0   ;;  %v1868_v2 = vld [vmem:[#allocation12 + $0x4] ss:$8 sps:$4 sm:$0xff]   ;;  %v1881_v11 = vld [vmem:[#allocation11 + $0x10] sm:$0xff]   ;;  %v604_v28 = vlaneseq }
  0xbe   : > { %2137 = vsyncadd (%p2742_p9), [#allocation13], 4294964224  ;;  %1672 = vmatprep.subr.bf16.mxu0 %v2175_v0  ;;  %726 = vmatprep.mubr.bf16.mxu1 %v2176_v1  ;;  %v1870_v3 = vld [vmem:[#allocation12] ss:$8 sps:$4 sm:$0xff]   ;;  %v1871_v4 = vld [vmem:[#allocation12 + $0x14] ss:$8 sps:$4 sm:$0xff]  }
  0xbf   : > { %1688 = vmatprep.mubr.msk.bf16.mxu0 %vm2177_vm0, %v2175_v0  ;;  %694 = vmatprep.subr.bf16.mxu1 %v1868_v2  ;;  %v1873_v5 = vld [vmem:[#allocation11] sm:$0xff]   ;;  %v1874_v6 = vld [vmem:[#allocation12 + $0x10] ss:$8 sps:$4 sm:$0xff]   ;;  %v1877_v8 = vld [vmem:[#allocation11 + $0x8] sm:$0xff]   ;;  %v2526_v29 = vshrl.u32 %v604_v28, 7  ;;  %vm736_vm1 = vcmask 257024  }
  0xc0   : > { %695 = vmatpush1.bf16.msra.mxu1 %v1870_v3  ;;  %v1875_v7 = vld [vmem:[#allocation12 + $0x24] ss:$8 sps:$4 sm:$0xff]   ;;  %1673 = vmatpush3.bf16.msra.mxu0 %v1873_v5  ;;  %v1878_v9 = vld [vmem:[#allocation12 + $0x20] ss:$8 sps:$4 sm:$0xff]   ;;  %v1879_v10 = vld [vmem:[#allocation12 + $0x34] ss:$8 sps:$4 sm:$0xff]  }
  0xc1   : > { %696 = vmatprep.subr.bf16.mxu1 %v1871_v4  ;;  %1674 = vmatprep.subr.bf16.mxu0 %v2175_v0  ;;  %v1882_v12 = vld [vmem:[#allocation12 + $0x30] ss:$8 sps:$4 sm:$0xff]   ;;  %v1883_v13 = vld [vmem:[#allocation12 + $0x44] ss:$8 sps:$4 sm:$0xff]   ;;  %v1886_v15 = vld [vmem:[#allocation12 + $0x40] ss:$8 sps:$4 sm:$0xff]  }
  0xc2   : > { %v1885_v14 = vld [vmem:[#allocation11 + $0x18] sm:$0xff]   ;;  %v1889_v17 = vld [vmem:[#allocation11 + $0x20] sm:$0xff]   ;;  %v1893_v20 = vld [vmem:[#allocation11 + $0x28] sm:$0xff]   ;;  %v606_v30 = vsub.s32 0, %v2526_v29  ;;  %v610_v32 = vsub.s32 1, %v2526_v29  ;;  %s2178_s11 = smov 64  }
  0xc3   : > { %v1887_v16 = vld [vmem:[#allocation12 + $0x54] ss:$8 sps:$4 sm:$0xff]   ;;  %v1890_v18 = vld [vmem:[#allocation12 + $0x50] ss:$8 sps:$4 sm:$0xff]   ;;  %v1891_v19 = vld [vmem:[#allocation12 + $0x64] ss:$8 sps:$4 sm:$0xff]  }
  0xc4   : > { %697 = vmatpush1.bf16.msra.mxu1 %v1874_v6  ;;  %1675 = vmatpush3.bf16.msra.mxu0 %v1877_v8  ;;  %v1894_v21 = vld [vmem:[#allocation12 + $0x60] ss:$8 sps:$4 sm:$0xff]   ;;  %v1895_v22 = vld [vmem:[#allocation12 + $0x74] ss:$8 sps:$4 sm:$0xff]   ;;  %v1898_v24 = vld [vmem:[#allocation12 + $0x70] ss:$8 sps:$4 sm:$0xff]  }
  0xc5   : > { %698 = vmatprep.subr.bf16.mxu1 %v1875_v7  ;;  %1676 = vmatprep.subr.bf16.mxu0 %v2175_v0  ;;  %v1897_v23 = vld [vmem:[#allocation11 + $0x30] sm:$0xff]   ;;  %v1899_v25 = vld [vmem:[#allocation11 + $0x38] sm:$0xff]   ;;  %s2179_s27 = smov 96   ;;  %vm816_vm2 = vcmask 261120   ;;  %vm1059_vm3 = vcmask 1043456   ;;  %s2180_s26 = smov 32  }
  0xc6   : > { %v474_v26 = vld [vmem:[%s418_s13] sm:$0xf]  ;;  %v2517_v27 = vld [vmem:[%s409_s22] sm:$0xf]  ;;  %v802_v7 = vand.u32 127, %v604_v28  ;;  %vm1007_vm5 = vcmask 64512  }
  0xc7   : > { %v602_v31 = vld [vmem:[%s2698_s5] sm:$0x3]  ;;  %vm1250_vm6 = vcmask 519424   ;;  %vm1259_vm7 = vcmask 781824   ;;  %vm1268_vm8 = vcmask 1044224   ;;  %s2743_s29 = sld [smem:[#allocation27_spill]] }
  0xc8   : > { %699 = vmatpush1.bf16.msra.mxu1 %v1878_v9  ;;  %1677 = vmatpush3.bf16.msra.mxu0 %v1881_v11  ;;  %v607_v33 = vrot.slane %v602_v31, %v606_v30  ;;  %v611_v34 = vrot.slane %v602_v31, %v610_v32  ;;  %v1578_v36 = vld [vmem:[%s2696_s3] ss:$0 sm:$0xff]  ;;  %vm803_vm4 = vcmp.ge.s32.totalorder %v2526_v29, %v802_v7  ;;  %s2744_s23 = sld [smem:[#allocation28_spill]]  ;;  %s1629_s2 = sshll.u32 %s2156_s16, 6 }
  0xc9   : > { %700 = vmatprep.subr.bf16.mxu1 %v1879_v10  ;;  %1678 = vmatprep.subr.bf16.mxu0 %v2175_v0  ;;  %s471_s13 = scalar_lea.vmem [#allocation15], %s2480_s4  ;;  %s2745_s8 = sld [smem:[#allocation29_spill]] }
  0xca   : > { %s1429_s19 = sshll.u32 %s471_s13, 4  ;;  %p2746_p2 = scmp.ne.s32.totalorder %s2735_s9, 0  ;;  %s2646_s19 = int_to_ptr.vmem [resolvable:$true] %s1429_s19 }
  0xcb   : > { %s2181_s16 = smov [#allocation15]  }
  0xcc   : > { %701 = vmatpush1.bf16.msra.mxu1 %v1882_v12  ;;  %1679 = vmatpush3.bf16.msra.mxu0 %v1885_v14  ;;  %s2074_s4 = sshll.u32 %s2181_s16, 4  ;;  %s2075_s4 = int_to_ptr.vmem [resolvable:$false] %s2074_s4 }
  0xcd   : > { %702 = vmatprep.subr.bf16.mxu1 %v1883_v13  ;;  %1680 = vmatprep.subr.bf16.mxu0 %v2175_v0  ;;  %s2076_s24 = scalar_lea.vmem %s2075_s4, 128  ;;  %p2077_p1 = scmp.lt.s32.totalorder %s2646_s19, %s2075_s4 }
  0xd0   : > { %703 = vmatpush1.bf16.msra.mxu1 %v1886_v15  ;;  %1681 = vmatpush3.bf16.msra.mxu0 %v1889_v17 }
  0xd1   : > { %704 = vmatprep.subr.bf16.mxu1 %v1887_v16  ;;  %1682 = vmatprep.subr.bf16.mxu0 %v2175_v0 }
  0xd4   : > { %705 = vmatpush1.bf16.msra.mxu1 %v1890_v18  ;;  %1683 = vmatpush3.bf16.msra.mxu0 %v1893_v20 }
  0xd5   : > { %706 = vmatprep.subr.bf16.mxu1 %v1891_v19  ;;  %1684 = vmatprep.subr.bf16.mxu0 %v2175_v0 }
  0xd8   : > { %707 = vmatpush1.bf16.msra.mxu1 %v1894_v21  ;;  %1685 = vmatpush3.bf16.msra.mxu0 %v1897_v23 }
  0xd9   : > { %708 = vmatprep.subr.bf16.mxu1 %v1895_v22  ;;  %1686 = vmatprep.subr.bf16.mxu0 %v2175_v0 }
  0xdc   : > { %709 = vmatpush1.bf16.msra.mxu1 %v1898_v24  ;;  %1687 = vmatpush3.bf16.msra.mxu0 %v1899_v25 }
  0xdd   : > { %1692 = vmatprep.subr.bf16.mxu1 %v2175_v0  ;;  %1716 = vmatprep.subr.bf16.mxu0 %v2175_v0 }
  0xdf   : > { %727 = vmatmul.mubr.bf16.vlgmr.msra.gmra.mrb[0].mxu1 %v474_v26  ;;  %1689 = vmatmul.mubr.bf16.vlgmr.msra.gmra.mrb[0].mxu0 %v2517_v27 }
  0xe0   : > { %1694 = vmatprep.mubr.msk.bf16.mxu1 %vm2177_vm0, %v2175_v0  ;;  %1718 = vmatprep.mubr.msk.bf16.mxu0 %vm2177_vm0, %v2175_v0 }
 0x1b2   : > { %v728_v35 = vpop.f32.mrb[0].mxu1  ;;  %v580_v41 = vpop.f32.mrb[0].mxu0 }
 0x1b3   : > { %v729_v37 = vadd.f32 %v728_v35, %v607_v33  ;;  %v730_v38 = vpop.f32.mrb[1].mxu1  ;;  %v581_v44 = vadd.f32 %v1578_v36, %v580_v41  ;;  %v1690_v45 = vpop.f32.mrb[1].mxu0 }
 0x1b4   : > { %v731_v39 = vadd.f32 %v730_v38, %v611_v34  ;;  %v732_v40 = vpop.f32.mrb[2].mxu1  ;;  %v583_v47 = vpop.f32.mrb[2].mxu0 }
 0x1b5   : > { %v738_v42 = vpack.c.bf16 %v729_v37, %v729_v37  ;;  %v733_v43 = vpop.f32.mrb[3].mxu1  ;;  %v735_v48 = vpack.c.bf16 %v581_v44, %v581_v44  ;;  %v1691_v49 = vpop.f32.mrb[3].mxu0 }
 0x1b6   : > { %v2536_v46 = vpack.c.bf16 %v731_v39, %v731_v39 }
 0x1b7   : > { %739 = vst.msk [vmem:[#allocation3] sm:$0xf] %vm736_vm1, %v738_v42  ;;  %771 = vrot.lane.b32.xlu1 %v738_v42, %s2178_s11  ;;  %753 = vrot.lane.b32.xlu0 %v738_v42, %s2179_s27  ;;  %737 = vst.msk [vmem:[#allocation2] sm:$0xf] %vm736_vm1, %v735_v48 }
 0x1b8   : > { %741 = vst.msk [vmem:[#allocation4] sm:$0xf] %vm736_vm1, %v2536_v46 }
 0x1bb   : > { %766 = vrot.lane.b32.xlu1 %v735_v48, %s2178_s11  ;;  %745 = vrot.lane.b32.xlu0 %v735_v48, %s2179_s27 }
 0x1be   : > { %v808_v50 = vld [vmem:[#allocation3] sm:$0xf]  ;;  %v804_v54 = vld [vmem:[#allocation2] sm:$0xf] }
 0x1bf   : > { %781 = vrot.lane.b32.xlu1 %v735_v48, %s2180_s26  ;;  %786 = vrot.lane.b32.xlu0 %v738_v42, %s2180_s26  ;;  %v821_v51 = vsel %vm816_vm2, %v808_v50, 0  ;;  %v812_v52 = vld [vmem:[#allocation4] sm:$0xf] }
 0x1c0   : > { %1693 = vmatpush3.bf16.xpose.msra.mxu1 %v821_v51  ;;  %v1061_v53 = vsel %vm1059_vm3, %v812_v52, 0 }
 0x1c1   : > { %1717 = vmatpush3.bf16.msra.mxu0 %v1061_v53  ;;  %1698 = vmatprep.subr.bf16.mxu1 %v2175_v0 }
 0x1c2   : > { %1728 = vmatprep.subr.bf16.mxu0 %v2175_v0 }
 0x1c7   : > { %1695 = vmatmul.mubr.msk.bf16.vlgmr.msra.gmra.mrb[4].mxu1 %vm816_vm2, %v804_v54 }
 0x1c8   : > { %1700 = vmatprep.mubr.msk.bf16.mxu1 %vm2177_vm0, %v2175_v0 }
 0x229   : > { %v772_v55 = vpop.permute.xlu1 %771  ;;  %v754_v56 = vpop.permute.xlu0 %753 }
 0x22a   : > { %775 = vst.msk [vmem:[#allocation3 + $0x8] sm:$0xf] %vm736_vm1, %v772_v55  ;;  %757 = vst.msk [vmem:[#allocation3 + $0x4] sm:$0xf] %vm736_vm1, %v754_v56 }
 0x22d   : > { %v767_v57 = vpop.permute.xlu1 %766  ;;  %v746_v58 = vpop.permute.xlu0 %745 }
 0x22e   : > { %770 = vst.msk [vmem:[#allocation2 + $0x8] sm:$0xf] %vm736_vm1, %v767_v57  ;;  %749 = vst.msk [vmem:[#allocation2 + $0x4] sm:$0xf] %vm736_vm1, %v746_v58 }
 0x231   : > { %v782_v59 = vpop.permute.xlu1 %781  ;;  %v787_v60 = vpop.permute.xlu0 %786  ;;  %v809_v61 = vld [vmem:[#allocation3 + $0x4] sm:$0xf]  ;;  %v810_v1 = vld [vmem:[#allocation3 + $0x8] sm:$0xf] }
 0x232   : > { %785 = vst.msk [vmem:[#allocation2 + $0xc] sm:$0xf] %vm736_vm1, %v782_v59  ;;  %790 = vst.msk [vmem:[#allocation3 + $0xc] sm:$0xf] %vm736_vm1, %v787_v60  ;;  %v867_v62 = vsel %vm816_vm2, %v809_v61, 0  ;;  %v913_v2 = vsel %vm816_vm2, %v810_v1, 0 }
 0x233   : > { %1699 = vmatpush3.bf16.xpose.msra.mxu1 %v867_v62 }
 0x234   : > { %1704 = vmatprep.subr.bf16.mxu1 %v2175_v0 }
 0x235   : > { %v805_v63 = vld [vmem:[#allocation2 + $0x4] sm:$0xf]  ;;  %v806_v4 = vld [vmem:[#allocation2 + $0x8] sm:$0xf] }
 0x239   : > { %v811_v3 = vld [vmem:[#allocation3 + $0xc] sm:$0xf]  ;;  %v807_v6 = vld [vmem:[#allocation2 + $0xc] sm:$0xf] }
 0x23a   : > { %1701 = vmatmul.mubr.msk.bf16.vlgmr.msra.gmra.mrb[8].mxu1 %vm816_vm2, %v805_v63  ;;  %v959_v5 = vsel %vm816_vm2, %v811_v3, 0 }
 0x23b   : > { %1705 = vmatpush3.bf16.xpose.msra.mxu1 %v913_v2  ;;  %1706 = vmatprep.mubr.msk.bf16.mxu1 %vm2177_vm0, %v2175_v0 }
 0x23c   : > { %1710 = vmatprep.subr.bf16.mxu1 %v2175_v0 }
 0x242   : > { %1707 = vmatmul.mubr.msk.bf16.vlgmr.msra.gmra.mrb[12].mxu1 %vm816_vm2, %v806_v4 }
 0x243   : > { %1711 = vmatpush3.bf16.xpose.msra.mxu1 %v959_v5  ;;  %1712 = vmatprep.mubr.msk.bf16.mxu1 %vm2177_vm0, %v2175_v0 }
 0x244   : > { %1722 = vmatprep.subr.bf16.mxu1 %v2175_v0 }
 0x24a   : > { %1713 = vmatmul.mubr.msk.bf16.vlgmr.msra.gmra.mrb[16].mxu1 %vm816_vm2, %v807_v6 }
 0x24b   : > { %1724 = vmatprep.mubr.msk.bf16.mxu1 %vm2177_vm0, %v2175_v0 }
 0x29a   : > { %v857_v8 = vpop.f32.mrb[4].mxu1 }
 0x29b   : > { %v1003_v9 = vsel %vm803_vm4, %v857_v8, -1e+20  ;;  %v1696_v10 = vpop.f32.mrb[5].mxu1 }
 0x29c   : > { %v860_v11 = vpop.f32.mrb[6].mxu1  ;;  %v1008_v12 = vsel %vm1007_vm5, %v1003_v9, -inf }
 0x29d   : > { %1009 = vmax.xlane.f32.xlu0 %v1008_v12  ;;  %v1697_v13 = vpop.f32.mrb[7].mxu1 }
 0x30d   : > { %v903_v14 = vpop.f32.mrb[8].mxu1 }
 0x30e   : > { %v1004_v15 = vsel %vm803_vm4, %v903_v14, -1e+20  ;;  %v1702_v16 = vpop.f32.mrb[9].mxu1 }
 0x30f   : > { %v906_v17 = vpop.f32.mrb[10].mxu1  ;;  %v1011_v18 = vsel %vm1007_vm5, %v1004_v15, -inf  ;;  %v1901_v16 = vld [vmem:[#allocation14 + $0x8] sm:$0xff]  }
 0x310   : > { %1012 = vmax.xlane.f32.xlu1 %v1011_v18  ;;  %v1703_v19 = vpop.f32.mrb[11].mxu1 }
 0x315   : > { %v949_v20 = vpop.f32.mrb[12].mxu1 }
 0x316   : > { %v1005_v21 = vsel %vm803_vm4, %v949_v20, -1e+20  ;;  %v1708_v22 = vpop.f32.mrb[13].mxu1 }
 0x317   : > { %v952_v23 = vpop.f32.mrb[14].mxu1  ;;  %v1014_v24 = vsel %vm1007_vm5, %v1005_v21, -inf  ;;  %v1902_v22 = vld [vmem:[#allocation14 + $0x10] sm:$0xff]  }
 0x318   : > { %1015 = vmax.xlane.f32.xlu0 %v1014_v24  ;;  %v1709_v25 = vpop.f32.mrb[15].mxu1  ;;  %v1903_v23 = vld [vmem:[#allocation14 + $0x18] sm:$0xff]   ;;  %v1904_v24 = vld [vmem:[#allocation14 + $0x20] sm:$0xff]  }
 0x31d   : > { %v995_v26 = vpop.f32.mrb[16].mxu1 }
 0x31e   : > { %v1006_v28 = vsel %vm803_vm4, %v995_v26, -1e+20  ;;  %v1714_v30 = vpop.f32.mrb[17].mxu1  ;;  %v1905_v26 = vld [vmem:[#allocation14 + $0x28] sm:$0xff]  }
 0x31f   : > { %v998_v31 = vpop.f32.mrb[18].mxu1  ;;  %v1017_v32 = vsel %vm1007_vm5, %v1006_v28, -inf }
 0x320   : > { %1018 = vmax.xlane.f32.xlu0 %v1017_v32  ;;  %v1715_v33 = vpop.f32.mrb[19].mxu1 }
 0x321   : > { %761 = vrot.lane.b32.xlu1 %v2536_v46, %s2179_s27  ;;  %v1906_v33 = vld [vmem:[#allocation14 + $0x30] sm:$0xff]  }
 0x32a   : > { %v1010_v34 = vpop.xlane.xlu0 %1009 }
 0x32b   : > { %v1020_v35 = vsub.f32 %v1003_v9, %v1010_v34  ;;  %v1907_v34 = vld [vmem:[#allocation14 + $0x38] sm:$0xff]  }
 0x32d   : > { %v1024_v36 = vmul.f32 1.442695, %v1020_v35 }
 0x32f   : > { %1908 = vpow2.f32 %v1024_v36 }
 0x339   : > { %v1909_v37 = vpop.eup %1908 }
 0x33a   : > { %v1032_v38 = vsel %vm1007_vm5, %v1909_v37, 0.0 }
 0x345   : > { %1033 = vadd.xlane.f32.xlu1 %v1032_v38 }
 0x39d   : > { %v1013_v39 = vpop.xlane.xlu1 %1012 }
 0x39e   : > { %v1021_v29 = vsub.f32 %v1004_v15, %v1013_v39  ;;  %v1900_v15 = vld [vmem:[#allocation14] sm:$0xff]  }
 0x3a0   : > { %v1026_v40 = vmul.f32 1.442695, %v1021_v29 }
 0x3a1   : > { %v762_v41 = vpop.permute.xlu1 %761 }
 0x3a2   : > { %1910 = vpow2.f32 %v1026_v40  ;;  %765 = vst.msk [vmem:[#allocation4 + $0x4] sm:$0xf] %vm736_vm1, %v762_v41 }
 0x3a5   : > { %v1016_v42 = vpop.xlane.xlu0 %1015 }
 0x3a6   : > { %v1022_v43 = vsub.f32 %v1005_v21, %v1016_v42 }
 0x3a8   : > { %v1028_v44 = vmul.f32 1.442695, %v1022_v43 }
 0x3a9   : > { %v813_v45 = vld [vmem:[#allocation4 + $0x4] sm:$0xf] }
 0x3aa   : > { %1912 = vpow2.f32 %v1028_v44  ;;  %v1107_v47 = vsel %vm1059_vm3, %v813_v45, 0 }
 0x3ab   : > { %1723 = vmatpush3.bf16.msra.mxu1 %v1107_v47 }
 0x3ac   : > { %v1911_v48 = vpop.eup %1910  ;;  %1734 = vmatprep.subr.bf16.mxu1 %v2175_v0 }
 0x3ad   : > { %v1019_v49 = vpop.xlane.xlu0 %1018  ;;  %v1035_v50 = vsel %vm1007_vm5, %v1911_v48, 0.0 }
 0x3ae   : > { %v1023_v51 = vsub.f32 %v1006_v28, %v1019_v49  ;;  %1036 = vadd.xlane.f32.xlu0 %v1035_v50  ;;  %v1382_v49 = vunpack.c.l.bf16 %v2517_v27 }
 0x3b0   : > { %v1030_v52 = vmul.f32 1.442695, %v1023_v51 }
 0x3b2   : > { %1914 = vpow2.f32 %v1030_v52 }
 0x3b4   : > { %v1913_v53 = vpop.eup %1912 }
 0x3b5   : > { %v1038_v54 = vsel %vm1007_vm5, %v1913_v53, 0.0 }
 0x3b6   : > { %1039 = vadd.xlane.f32.xlu1 %v1038_v54 }
 0x3bc   : > { %v1915_v55 = vpop.eup %1914 }
 0x3bd   : > { %v1041_v56 = vsel %vm1007_vm5, %v1915_v55, 0.0 }
 0x3be   : > { %1042 = vadd.xlane.f32.xlu0 %v1041_v56 }
 0x3c7   : > { %791 = vrot.lane.b32.xlu1 %v2536_v46, %s2180_s26 }
 0x3d2   : > { %v1034_v57 = vpop.xlane.xlu1 %1033 }
 0x3d3   : > { %1916 = vrcp.f32 %v1034_v57 }
 0x3d4   : > { %776 = vrot.lane.b32.xlu0 %v2536_v46, %s2178_s11 }
 0x3dd   : > { %v1917_v58 = vpop.eup %1916 }
 0x3de   : > { %v1048_v59 = vmul.f32 %v1917_v58, %v1909_v37 }
 0x3e0   : > { %v1052_v60 = vpack.c.bf16 %v1048_v59, %v1048_v59 }
 0x3e2   : > { %1719 = vmatmul.mubr.msk.bf16.vlgmr.msra.gmra.mrb[4].mxu0 %vm1007_vm5, %v1052_v60 }
 0x3e3   : > { %1730 = vmatprep.mubr.msk.bf16.mxu0 %vm2177_vm0, %v2175_v0 }
 0x43b   : > { %v1037_v61 = vpop.xlane.xlu0 %1036 }
 0x43c   : > { %1918 = vrcp.f32 %v1037_v61 }
 0x443   : > { %v1040_v62 = vpop.xlane.xlu1 %1039 }
 0x444   : > { %1920 = vrcp.f32 %v1040_v62 }
 0x446   : > { %v1919_v63 = vpop.eup %1918 }
 0x447   : > { %v1049_v1 = vmul.f32 %v1919_v63, %v1911_v48  ;;  %v792_v2 = vpop.permute.xlu1 %791  ;;  %v1617_v48 = vld [vmem:[%s2700_s7] ss:$0 sm:$0xff] }
 0x448   : > { %795 = vst.msk [vmem:[#allocation4 + $0xc] sm:$0xf] %vm736_vm1, %v792_v2  ;;  %v1626_v63 = vld [vmem:[%s2743_s29] ss:$0 sm:$0xff] }
 0x449   : > { %v1053_v3 = vpack.c.bf16 %v1049_v1, %v1049_v1  ;;  %v1627_v2 = vld [vmem:[%s2744_s23] ss:$0 sm:$0xff] }
 0x44b   : > { %1725 = vmatmul.mubr.msk.bf16.vlgmr.msra.gmra.mrb[20].mxu1 %vm1007_vm5, %v1053_v3  ;;  %v1043_v46 = vpop.xlane.xlu0 %1042 }
 0x44c   : > { %1922 = vrcp.f32 %v1043_v46  ;;  %1736 = vmatprep.mubr.msk.bf16.mxu1 %vm2177_vm0, %v2175_v0 }
 0x44e   : > { %v1921_v7 = vpop.eup %1920 }
 0x44f   : > { %v777_v4 = vpop.permute.xlu0 %776  ;;  %v815_v5 = vld [vmem:[#allocation4 + $0xc] sm:$0xf]  ;;  %v1050_v9 = vmul.f32 %v1921_v7, %v1913_v53 }
 0x450   : > { %780 = vst.msk [vmem:[#allocation4 + $0x8] sm:$0xf] %vm736_vm1, %v777_v4  ;;  %v1199_v6 = vsel %vm1059_vm3, %v815_v5, 0 }
 0x451   : > { %1735 = vmatpush3.bf16.msra.mxu1 %v1199_v6  ;;  %v1054_v14 = vpack.c.bf16 %v1050_v9, %v1050_v9 }
 0x456   : > { %v1923_v8 = vpop.eup %1922 }
 0x457   : > { %v1051_v10 = vmul.f32 %v1923_v8, %v1915_v55  ;;  %v814_v11 = vld [vmem:[#allocation4 + $0x8] sm:$0xf] }
 0x458   : > { %v1153_v12 = vsel %vm1059_vm3, %v814_v11, 0 }
 0x459   : > { %1729 = vmatpush3.bf16.msra.mxu0 %v1153_v12  ;;  %v1055_v13 = vpack.c.bf16 %v1051_v10, %v1051_v10 }
 0x45a   : > { %1740 = vmatprep.subr.bf16.mxu0 %v2175_v0 }
 0x45b   : > { %1737 = vmatmul.mubr.msk.bf16.vlgmr.msra.gmra.mrb[24].mxu1 %vm1007_vm5, %v1055_v13 }
 0x45c   : > { %1731 = vmatmul.mubr.msk.bf16.vlgmr.msra.gmra.mrb[8].mxu0 %vm1007_vm5, %v1054_v14 }
 0x45d   : > { %1756 = vmatprep.mubr.msk.bf16.mxu0 %vm2177_vm0, %v2175_v0  ;;  %1741 = vmatpush3.bf16.msra.mxu0 %v1900_v15 }
 0x45e   : > { %1742 = vmatprep.subr.bf16.mxu0 %v2175_v0 }
 0x461   : > { %1743 = vmatpush3.bf16.msra.mxu0 %v1901_v16 }
 0x462   : > { %1744 = vmatprep.subr.bf16.mxu0 %v2175_v0 }
 0x465   : > { %1745 = vmatpush3.bf16.msra.mxu0 %v1902_v22 }
 0x466   : > { %1746 = vmatprep.subr.bf16.mxu0 %v2175_v0 }
 0x469   : > { %1747 = vmatpush3.bf16.msra.mxu0 %v1903_v23 }
 0x46a   : > { %1748 = vmatprep.subr.bf16.mxu0 %v2175_v0 }
 0x46d   : > { %1749 = vmatpush3.bf16.msra.mxu0 %v1904_v24 }
 0x46e   : > { %1750 = vmatprep.subr.bf16.mxu0 %v2175_v0 }
 0x471   : > { %1751 = vmatpush3.bf16.msra.mxu0 %v1905_v26 }
 0x472   : > { %1752 = vmatprep.subr.bf16.mxu0 %v2175_v0 }
 0x475   : > { %1753 = vmatpush3.bf16.msra.mxu0 %v1906_v33 }
 0x476   : > { %1754 = vmatprep.subr.bf16.mxu0 %v2175_v0 }
 0x479   : > { %1755 = vmatpush3.bf16.msra.mxu0 %v1907_v34 }
 0x4b5   : > { %v1097_v17 = vpop.f32.mrb[4].mxu0 }
 0x4b6   : > { %v1241_v18 = vpack.c.bf16 %v1097_v17, %v1097_v17  ;;  %v1720_v19 = vpop.f32.mrb[5].mxu0 }
 0x4b7   : > { %v1100_v20 = vpop.f32.mrb[6].mxu0 }
 0x4b8   : > { %1242 = vst.msk [vmem:[#allocation5] sm:$0xf] %vm736_vm1, %v1241_v18  ;;  %v1721_v21 = vpop.f32.mrb[7].mxu0 }
 0x51e   : > { %v1143_v25 = vpop.f32.mrb[20].mxu1 }
 0x51f   : > { %v1635_v28 = vpack.c.bf16 %v1143_v25, %v1143_v25  ;;  %v1726_v30 = vpop.f32.mrb[21].mxu1 }
 0x520   : > { %v1146_v31 = vpop.f32.mrb[22].mxu1 }
 0x521   : > { %1247 = vrot.lane.b32.xlu1 %v1635_v28, %s2180_s26  ;;  %v1727_v32 = vpop.f32.mrb[23].mxu1  ;;  %s2070_s26 = scalar_lea.vmem %s2646_s19, 64 }
 0x522   : > { %p2071_p0 = scmp.ne.s32.totalorder %s2646_s19, %s2070_s26  ;;  %p2078_p13 = scmp.lt.s32.totalorder %s2076_s24, %s2070_s26 }
 0x524   : > { %p2072_p4 = pnand %p2071_p0, %p2746_p2  ;;  %p2079_p10 = por %p2078_p13, %p2077_p1 }
 0x526   : > { %p2073_p8 = pneg %p2072_p4 }
 0x528   : > { %p2080_p11 = pnand %p2079_p10, %p2073_p8 }
 0x52e   : > { %v1235_v35 = vpop.f32.mrb[24].mxu1 }
 0x52f   : > { %v1637_v36 = vpack.c.bf16 %v1235_v35, %v1235_v35  ;;  %v1189_v37 = vpop.f32.mrb[8].mxu0  ;;  %v1738_v38 = vpop.f32.mrb[25].mxu1 }
 0x530   : > { %v1636_v39 = vpack.c.bf16 %v1189_v37, %v1189_v37  ;;  %v1732_v29 = vpop.f32.mrb[9].mxu0  ;;  %v1238_v40 = vpop.f32.mrb[26].mxu1 }
 0x531   : > { %1265 = vrot.lane.b32.xlu1 %v1637_v36, %s2179_s27  ;;  %v1192_v41 = vpop.f32.mrb[10].mxu0  ;;  %v1739_v42 = vpop.f32.mrb[27].mxu1  ;;  %s1415_s27 = scalar_lea.sflag [#allocation8], %s2477_s25 }
 0x532   : > { %1256 = vrot.lane.b32.xlu0 %v1636_v39, %s2178_s11  ;;  %v1733_v43 = vpop.f32.mrb[11].mxu0  ;;  %s2644_s11 = scalar_lea.hbm %s2745_s8, %s1629_s2 }
 0x593   : > { %v1248_v44 = vpop.permute.xlu1 %1247 }
 0x594   : > { %1251 = vst.msk [vmem:[#allocation5] sm:$0xf] %vm1250_vm6, %v1248_v44 }
 0x5a3   : > { %v1266_v45 = vpop.permute.xlu1 %1265 }
 0x5a4   : > { %v1257_v0 = vpop.permute.xlu0 %1256 }
 0x5a5   : > { %1260 = vst.msk [vmem:[#allocation5] sm:$0xf] %vm1259_vm7, %v1257_v0 }
 0x5a6   : > { %1269 = vst.msk [vmem:[#allocation5] sm:$0xf] %vm1268_vm8, %v1266_v45 }
 0x5ad   : > { %v1270_v47 = vld [vmem:[#allocation5] sm:$0xf] }
 0x5ae   : > { %1757 = vmatmul.mubr.bf16.vlgmr.msra.gmra.mrb[12].mxu0 %v1270_v47 }
 0x681   : > { %v1376_v50 = vpop.f32.mrb[12].mxu0 }
 0x682   : > { %v1377_v51 = vadd.f32 %v1617_v48, %v1376_v50  ;;  %v1758_v52 = vpop.f32.mrb[13].mxu0 }
 0x683   : > { %v1379_v53 = vpop.f32.mrb[14].mxu0 }
 0x684   : > { %v1759_v54 = vpop.f32.mrb[15].mxu0  ;;  %v1383_v55 = vadd.f32 %v1382_v49, %v1377_v51 }
 0x686   : > { %1384 = vadd.xlane.f32.xlu0 %v1383_v55 }
 0x713   : > { %v1385_v56 = vpop.xlane.xlu0 %1384 }
 0x714   : > { %v1387_v57 = vmul.f32 0.0078125, %v1385_v56 }
 0x716   : > { %v1388_v58 = vsub.f32 %v1383_v55, %v1387_v57 }
 0x718   : > { %v1389_v59 = vmul.f32 %v1388_v58, %v1388_v58 }
 0x71a   : > { %1390 = vadd.xlane.f32.xlu1 %v1389_v59 }
 0x7a7   : > { %v1391_v60 = vpop.xlane.xlu1 %1390 }
 0x7a8   : > { %v1392_v61 = vmul.f32 0.0078125, %v1391_v60 }
 0x7aa   : > { %v1393_v62 = vadd.f32 1e-05, %v1392_v61 }
 0x7ac   : > { %1924 = vrsqrt.f32 %v1393_v62 }
 0x7b6   : > { %v1925_v27 = vpop.eup %1924 }
 0x7b7   : > { %v1395_v1 = vmul.f32 %v1925_v27, %v1388_v58 }
 0x7b9   : > { %v1403_v3 = vmul.f32 %v1626_v63, %v1395_v1 }
 0x7bb   : > { %v1411_v46 = vadd.f32 %v1627_v2, %v1403_v3 }
 0x7bd   : > { %v1412_v4 = vpack.c.bf16 %v1411_v46, %v1411_v46 }
 0x7bf   : > { %1413 = vst [vmem:[%s471_s13] sm:$0xf] %v1412_v4 }
 0x7c0   : > { %2083 = shalt.err (!%p2080_p11)
}
 0x7c1   : > { %s2084_s25 = scalar_lea.hbm %s2644_s11, 64  ;;  %s2088_s10 = scalar_lea.hbm %s2745_s8, 128 }
 0x7c2   : > { %p2085_p6 = scmp.ne.s32.totalorder %s2644_s11, %s2084_s25  ;;  %p2089_p12 = scmp.lt.u32.totalorder %s2644_s11, %s2745_s8 }
 0x7c3   : > { %p2090_p5 = scmp.lt.u32.totalorder %s2088_s10, %s2084_s25  ;;  %p2092_p0 = scmp.lt.u32.totalorder %s2084_s25, %s2644_s11 }
 0x7c4   : > { %p2086_p3 = pnand %p2085_p6, %p2746_p2 }
 0x7c5   : > { %p2091_p9 = por %p2090_p5, %p2089_p12 }
 0x7c6   : > { %p2087_p7 = pneg %p2086_p3 }
 0x7c7   : > { %p2093_p4 = por %p2092_p0, %p2091_p9 }
 0x7c9   : > { %p2094_p8 = pnand %p2093_p4, %p2087_p7 }
 0x7cb   : > { %2097 = shalt.err (!%p2094_p8)
}
 0x7cc   : > { %1776 = dma.vmem_to_hbm [thread:$0]  (%p2746_p2), %s2646_s19, 64, %s2644_s11, %s1415_s27  }
 0x7cd PF: > { %s2747_s22 = sld [smem:[#allocation21_spill]]  ;;  %s2748_s23 = sld [smem:[#allocation22_spill]] }
 0x7ce   : > { %p2750_p13 = scmp.ge.s32.totalorder %s2164_s18, 2 }
 0x7d3   : > { %s1441_s2 = sand.u32 1, %s2747_s22   ;;  %p2749_p1 = scmp.ne.s32.totalorder %s2748_s23, 0 }
 0x7d4   : > { %s1442_s13 = scalar_lea.sflag [#allocation8], %s1441_s2 }
 0x7d5   : > { %p1796_p10 = pnand %p2750_p13, %p2749_p1 }
 0x7d7   : > { %2139 = dma.done.wait (!%p1796_p10), %s1442_s13, 64  }
 0x7d8   : > { %2141 = vsyncadd (!%p1796_p10), %s1442_s13, 4294967232  ;;  %s30_s18 = sadd.s32 1, %s2164_s18   ;;  %s2751_s9 = sld [smem:[#allocation23_spill]] }
 0x7d9   : > { %p27_p11 = scmp.ge.s32.totalorder %s30_s18, 4   ;;  %s2752_s13 = smov %s2148_s14 }
 0x7da   : > { %s2753_s14 = smov %s2152_s15  ;;  %s2754_s15 = smov %s2404_s20 }
 0x7db   : > { %s2755_s16 = smov %s2160_s17  ;;  %29 = sbr.rel (!%p27_p11) target bundleno = 16 (0x10), region = 139 }
 0x7de   : > { %s2756_s17 = smov %s2751_s9 }
 0x7e2   :  { %1447 = vsyncpa [#allocation7], 1 }
 0x7e3   :  { %1449 = vsyncpa [#allocation7 + $0x1], 1 }
 0x7e4   :  { %1450 = vsyncpa [#allocation10], 1 }
 0x7e5   :  { %1452 = vsyncpa [#allocation10 + $0x1], 1 }
 0x7e6   :  { %1453 = vsyncpa [#allocation13], 1 }
 0x7e7   :  { %1454 = vsyncpa [#allocation8], 1 }
 0x7e8   :  { %1456 = vsyncpa [#allocation8 + $0x1], 1 }

</bundles_post_ra>
